<compile_context>
chip_gen: v5e
topology: v5e:2x2
jax: 0.10.0
libtpu: 0.0.40
codegen_flags: <defaults>
</compile_context>

<pallas_src>
import math
from functools import partial

import jax
import jax.numpy as jnp
from jax.experimental import pallas as pl
from jax.experimental.pallas import tpu as pltpu

# ---- small DPR/BERT-like hyper-params ----
VOCAB      = 100
TYPE_VOCAB = 2
MAX_POS    = 512          # matches self.max_length = 512 truncation
HIDDEN     = 32
N_HEADS    = 2
HEAD_DIM   = HIDDEN // N_HEADS
FFN        = 64
N_LAYERS   = 2
N_PASSAGES = 64
PAD_N      = max(128, ((N_PASSAGES + 127) // 128) * 128)   # lane-dense score width
SMALL_W    = max(3 * HIDDEN, FFN)                          # packed small-param width
LN_EPS     = 1e-12
NEG        = -1e30


def _layernorm(x, g, b):
    mu = jnp.mean(x, axis=-1, keepdims=True)
    var = jnp.mean((x - mu) ** 2, axis=-1, keepdims=True)
    return (x - mu) * jax.lax.rsqrt(var + LN_EPS) * g + b


def _gelu(x):
    # BERT tanh-approx GELU (f32)
    return 0.5 * x * (1.0 + jnp.tanh(0.7978845608028654 * (x + 0.044715 * x * x * x)))


# ---------------------------------------------------------------------------
# Fused kernel (per sequence): N_LAYERS transformer layers + CLS pooling +
# inner-product retrieval top-k
# ---------------------------------------------------------------------------
def fused_forward_kernel(x_ref, wqkv_ref, wo_ref, w1_ref, w2_ref,
                         smalls_ref, pass_t_ref, idx_ref, *, topk, n_passages):
    x = x_ref[0]                                     # (S, H) f32, one sequence

    for l in range(N_LAYERS):                        # static unroll (N_LAYERS = 2)
        smalls = smalls_ref[l]                       # (8, SMALL_W) f32, packed params
        bqkv  = smalls[0:1, :3 * HIDDEN]             # (1, 3H)  (Q part pre-scaled)
        bo    = smalls[1:2, :HIDDEN]
        ln1_g = smalls[2:3, :HIDDEN]
        ln1_b = smalls[3:4, :HIDDEN]
        b1    = smalls[4:5, :FFN]
        b2    = smalls[5:6, :HIDDEN]
        ln2_g = smalls[6:7, :HIDDEN]
        ln2_b = smalls[7:8, :HIDDEN]

        # fused QKV projection: one (S,H)x(H,3H) MXU matmul (bf16 in, f32 acc)
        qkv = jnp.dot(x.astype(jnp.bfloat16), wqkv_ref[l],
                      preferred_element_type=jnp.float32) + bqkv        # (S, 3H)

        ctx_heads = []
        for h in range(N_HEADS):                     # static lane slices per head
            qh = qkv[:, h * HEAD_DIM:(h + 1) * HEAD_DIM]
            kh = qkv[:, HIDDEN + h * HEAD_DIM:HIDDEN + (h + 1) * HEAD_DIM]
            vh = qkv[:, 2 * HIDDEN + h * HEAD_DIM:2 * HIDDEN + (h + 1) * HEAD_DIM]
            # Q @ K^T via dot_general contracting last dims (no transposed copy)
            s = jax.lax.dot_general(qh.astype(jnp.bfloat16), kh.astype(jnp.bfloat16),
                                    (((1,), (1,)), ((), ())),
                                    preferred_element_type=jnp.float32)  # (S, S)
            s = s - jnp.max(s, axis=-1, keepdims=True)                   # f32 softmax
            p = jnp.exp(s)
            p = p * pl.reciprocal(jnp.sum(p, axis=-1, keepdims=True), approx=True)
            ctx_heads.append(jnp.dot(p.astype(jnp.bfloat16), vh.astype(jnp.bfloat16),
                                     preferred_element_type=jnp.float32))  # (S, HD)
        ctx = jnp.concatenate(ctx_heads, axis=-1)                        # (S, H)

        attn = jnp.dot(ctx.astype(jnp.bfloat16), wo_ref[l],
                       preferred_element_type=jnp.float32) + bo

        h1 = _layernorm(x + attn, ln1_g, ln1_b)
        ff = _gelu(jnp.dot(h1.astype(jnp.bfloat16), w1_ref[l],
                           preferred_element_type=jnp.float32) + b1)
        ff = jnp.dot(ff.astype(jnp.bfloat16), w2_ref[l],
                     preferred_element_type=jnp.float32) + b2
        x = _layernorm(h1 + ff, ln2_g, ln2_b)

    # DPR pooler_output = CLS hidden state (row 0): plain static row slice.
    cls = x[0:1, :]                                                      # (1, H)

    # Retrieval: inner-product scores over the lane-dense (H, PAD_N) passage matrix.
    scores = jnp.dot(cls.astype(jnp.bfloat16), pass_t_ref[...],
                     preferred_element_type=jnp.float32)                 # (1, PAD_N)
    padn = scores.shape[-1]
    col = jax.lax.broadcasted_iota(jnp.int32, scores.shape, 1)
    scores = jnp.where(col < n_passages, scores, NEG)                    # mask pad cols

    out = jnp.zeros(scores.shape, jnp.int32)
    s = scores
    for j in range(topk):                     # exact top-k, lowest-index tie-break
        m = jnp.max(s, axis=-1, keepdims=True)
        cand = jnp.where(s >= m, col, padn)
        idx = jnp.min(cand, axis=-1, keepdims=True)                      # (1, 1)
        out = jnp.where(col == j, idx, out)                              # pick j -> col j
        s = jnp.where(col == idx, NEG, s)                                # mask chosen
    idx_ref[0] = out                                                     # (1, PAD_N)


def fused_forward(x, stacked, pass_t_pad, *, topk):
    B, S, H = x.shape

    def rep_spec(a):
        nd = a.ndim
        return pl.BlockSpec(a.shape, lambda b, _nd=nd: (0,) * _nd)

    return pl.pallas_call(
        partial(fused_forward_kernel, topk=topk, n_passages=N_PASSAGES),
        out_shape=jax.ShapeDtypeStruct((B, 1, PAD_N), jnp.int32),
        grid=(B,),
        in_specs=[pl.BlockSpec((1, S, H), lambda b: (b, 0, 0)),
                  rep_spec(stacked["wqkv"]),
                  rep_spec(stacked["wo"]),
                  rep_spec(stacked["w1"]),
                  rep_spec(stacked["w2"]),
                  rep_spec(stacked["smalls"]),
                  rep_spec(pass_t_pad)],
        out_specs=pl.BlockSpec((1, 1, PAD_N), lambda b: (b, 0, 0)),
        compiler_params=pltpu.CompilerParams(
            dimension_semantics=("parallel",),
            vmem_limit_bytes=32 * 1024 * 1024),
    )(x, stacked["wqkv"], stacked["wo"], stacked["w1"], stacked["w2"],
      stacked["smalls"], pass_t_pad)


# ---------------------------------------------------------------------------
# Weight preparation (done once): stack layers, fold attention scale into Q,
# pack all small params into one (L, 8, SMALL_W) array, cast matmul weights bf16
# ---------------------------------------------------------------------------
def prepare_weights(params):
    H, FF = HIDDEN, FFN
    scale = 1.0 / math.sqrt(HEAD_DIM)
    wqkv_l, wo_l, w1_l, w2_l, smalls_l = [], [], [], [], []
    for lp in params["layers"]:
        wqkv = lp["wqkv"].at[:, :H].multiply(scale)      # fold 1/sqrt(d) into Q weight
        bqkv = lp["bqkv"].at[:, :H].multiply(scale)      # ... and Q bias
        wqkv_l.append(wqkv)
        wo_l.append(lp["wo"])
        w1_l.append(lp["w1"])
        w2_l.append(lp["w2"])

        smalls = jnp.zeros((8, SMALL_W), jnp.float32)
        smalls = smalls.at[0, :3 * H].set(bqkv[0])
        smalls = smalls.at[1, :H].set(lp["bo"][0])
        smalls = smalls.at[2, :H].set(lp["ln1_g"][0])
        smalls = smalls.at[3, :H].set(lp["ln1_b"][0])
        smalls = smalls.at[4, :FF].set(lp["b1"][0])
        smalls = smalls.at[5, :H].set(lp["b2"][0])
        smalls = smalls.at[6, :H].set(lp["ln2_g"][0])
        smalls = smalls.at[7, :H].set(lp["ln2_b"][0])
        smalls_l.append(smalls)

    return {
        "wqkv":   jnp.stack(wqkv_l).astype(jnp.bfloat16),   # (L, H, 3H)
        "wo":     jnp.stack(wo_l).astype(jnp.bfloat16),     # (L, H, H)
        "w1":     jnp.stack(w1_l).astype(jnp.bfloat16),     # (L, H, FFN)
        "w2":     jnp.stack(w2_l).astype(jnp.bfloat16),     # (L, FFN, H)
        "smalls": jnp.stack(smalls_l),                      # (L, 8, SMALL_W) f32
    }


# ---------------------------------------------------------------------------
# Full forward pass (embedding gather + embedding LN stay as glue in plain JAX)
# ---------------------------------------------------------------------------
def magical_model_forward(params, stacked, passage_emb, input_ids, token_type_ids, topk):
    # truncate to max_length, matching `input_ids[:, :self.max_length]`
    input_ids = input_ids[:, :MAX_POS]
    token_type_ids = token_type_ids[:, :MAX_POS]
    B, S = input_ids.shape

    x = (params["word_emb"][input_ids]
         + params["type_emb"][token_type_ids]
         + params["pos_emb"][:S][None, :, :])
    x = _layernorm(x, params["emb_ln_g"], params["emb_ln_b"])            # (B, S, H) f32

    # pre-transposed, lane-padded passage matrix (H, PAD_N), bf16 for the MXU
    pass_t_pad = (jnp.zeros((HIDDEN, PAD_N), jnp.float32)
                  .at[:, :N_PASSAGES].set(passage_emb.T)
                  .astype(jnp.bfloat16))

    idx_pad = fused_forward(x, stacked, pass_t_pad, topk=topk)           # (B, 1, PAD_N)
    return idx_pad[:, 0, :topk]


def init_params(key):
    std = 0.02
    keys = jax.random.split(key, 3 + N_LAYERS)
    params = {
        "word_emb": jax.random.normal(keys[0], (VOCAB, HIDDEN), jnp.float32) * std,
        "type_emb": jax.random.normal(keys[1], (TYPE_VOCAB, HIDDEN), jnp.float32) * std,
        "pos_emb":  jax.random.normal(keys[2], (MAX_POS, HIDDEN), jnp.float32) * std,
        "emb_ln_g": jnp.ones((HIDDEN,), jnp.float32),
        "emb_ln_b": jnp.zeros((HIDDEN,), jnp.float32),
        "layers": [],
    }
    for i in range(N_LAYERS):
        lk = jax.random.split(keys[3 + i], 4)
        params["layers"].append({
            "wqkv": jax.random.normal(lk[0], (HIDDEN, 3 * HIDDEN), jnp.float32) * std,
            "bqkv": jnp.zeros((1, 3 * HIDDEN), jnp.float32),
            "wo":   jax.random.normal(lk[1], (HIDDEN, HIDDEN), jnp.float32) * std,
            "bo":   jnp.zeros((1, HIDDEN), jnp.float32),
            "ln1_g": jnp.ones((1, HIDDEN), jnp.float32),
            "ln1_b": jnp.zeros((1, HIDDEN), jnp.float32),
            "w1":   jax.random.normal(lk[2], (HIDDEN, FFN), jnp.float32) * std,
            "b1":   jnp.zeros((1, FFN), jnp.float32),
            "w2":   jax.random.normal(lk[3], (FFN, HIDDEN), jnp.float32) * std,
            "b2":   jnp.zeros((1, HIDDEN), jnp.float32),
            "ln2_g": jnp.ones((1, HIDDEN), jnp.float32),
            "ln2_b": jnp.zeros((1, HIDDEN), jnp.float32),
        })
    return params


if __name__ == "__main__":
    key = jax.random.PRNGKey(0)
    kp, kpass, kid = jax.random.split(key, 3)

    params = init_params(kp)
    stacked = prepare_weights(params)
    passage_embeddings = jax.random.normal(kpass, (N_PASSAGES, HIDDEN), jnp.float32)

    B, S = 2, 8
    input_ids = jax.random.randint(kid, (B, S), 0, VOCAB, dtype=jnp.int32)
    token_type_ids = jnp.zeros((B, S), jnp.int32)
    topk = 4

    retrieved = magical_model_forward(params, stacked, passage_embeddings,
                                      input_ids, token_type_ids, topk)
    retrieved = jax.block_until_ready(retrieved)

    assert retrieved.shape == (B, topk) and retrieved.dtype == jnp.int32
    print("KERNEL_OK")
</pallas_src>

<mosaic_0001>
module attributes {stable_mosaic.version = 11 : i64} {
  func.func @fused_forward_kernel(%arg0: i32, %arg1: memref<1x8x32xf32, #tpu.memory_space<vmem>>, %arg2: memref<2x32x96xbf16, #tpu.memory_space<vmem>>, %arg3: memref<2x32x32xbf16, #tpu.memory_space<vmem>>, %arg4: memref<2x32x64xbf16, #tpu.memory_space<vmem>>, %arg5: memref<2x64x32xbf16, #tpu.memory_space<vmem>>, %arg6: memref<2x8x96xf32, #tpu.memory_space<vmem>>, %arg7: memref<32x128xbf16, #tpu.memory_space<vmem>>, %arg8: memref<1x1x128xi32, #tpu.memory_space<vmem>>) attributes {dimension_semantics = [#tpu.dimension_semantics<parallel>], iteration_bounds = array<i64: 2>, scalar_prefetch = 0 : i64, scratch_operands = 0 : i64, tpu.core_type = #tpu.core_type<tc>, window_params = [{transform_indices = @transform_0, window_bounds = array<i64: 1, 8, 32>}, {pipeline_mode = #tpu.pipeline_mode<synchronous>, transform_indices = @transform_1, window_bounds = array<i64: 2, 32, 96>}, {pipeline_mode = #tpu.pipeline_mode<synchronous>, transform_indices = @transform_2, window_bounds = array<i64: 2, 32, 32>}, {pipeline_mode = #tpu.pipeline_mode<synchronous>, transform_indices = @transform_3, window_bounds = array<i64: 2, 32, 64>}, {pipeline_mode = #tpu.pipeline_mode<synchronous>, transform_indices = @transform_4, window_bounds = array<i64: 2, 64, 32>}, {pipeline_mode = #tpu.pipeline_mode<synchronous>, transform_indices = @transform_5, window_bounds = array<i64: 2, 8, 96>}, {pipeline_mode = #tpu.pipeline_mode<synchronous>, transform_indices = @transform_6, window_bounds = array<i64: 32, 128>}, {transform_indices = @transform_7, window_bounds = array<i64: 1, 1, 128>}]} {
    %c0 = arith.constant 0 : index
    %c0_0 = arith.constant 0 : index
    %c0_1 = arith.constant 0 : index
    %0 = vector.load %arg1[%c0, %c0_0, %c0_1] : memref<1x8x32xf32, #tpu.memory_space<vmem>>, vector<1x8x32xf32>
    %1 = vector.shape_cast %0 : vector<1x8x32xf32> to vector<8x32xf32>
    %c0_2 = arith.constant 0 : index
    %c0_3 = arith.constant 0 : index
    %c0_4 = arith.constant 0 : index
    %2 = vector.load %arg6[%c0_2, %c0_3, %c0_4] : memref<2x8x96xf32, #tpu.memory_space<vmem>>, vector<1x8x96xf32>
    %3 = vector.shape_cast %2 : vector<1x8x96xf32> to vector<8x96xf32>
    %4 = vector.extract_strided_slice %3 {offsets = [0, 0], sizes = [1, 96], strides = [1, 1]} : vector<8x96xf32> to vector<1x96xf32>
    %5 = vector.extract_strided_slice %3 {offsets = [1, 0], sizes = [1, 32], strides = [1, 1]} : vector<8x96xf32> to vector<1x32xf32>
    %6 = vector.extract_strided_slice %3 {offsets = [2, 0], sizes = [1, 32], strides = [1, 1]} : vector<8x96xf32> to vector<1x32xf32>
    %7 = vector.extract_strided_slice %3 {offsets = [3, 0], sizes = [1, 32], strides = [1, 1]} : vector<8x96xf32> to vector<1x32xf32>
    %8 = vector.extract_strided_slice %3 {offsets = [4, 0], sizes = [1, 64], strides = [1, 1]} : vector<8x96xf32> to vector<1x64xf32>
    %9 = vector.extract_strided_slice %3 {offsets = [5, 0], sizes = [1, 32], strides = [1, 1]} : vector<8x96xf32> to vector<1x32xf32>
    %10 = vector.extract_strided_slice %3 {offsets = [6, 0], sizes = [1, 32], strides = [1, 1]} : vector<8x96xf32> to vector<1x32xf32>
    %11 = vector.extract_strided_slice %3 {offsets = [7, 0], sizes = [1, 32], strides = [1, 1]} : vector<8x96xf32> to vector<1x32xf32>
    %12 = arith.truncf %1 : vector<8x32xf32> to vector<8x32xbf16>
    %c0_5 = arith.constant 0 : index
    %c0_6 = arith.constant 0 : index
    %c0_7 = arith.constant 0 : index
    %13 = vector.load %arg2[%c0_5, %c0_6, %c0_7] : memref<2x32x96xbf16, #tpu.memory_space<vmem>>, vector<1x32x96xbf16>
    %14 = vector.shape_cast %13 : vector<1x32x96xbf16> to vector<32x96xbf16>
    %cst = arith.constant dense<0.000000e+00> : vector<8x96xf32>
    %15 = tpu.matmul %12, %14, %cst {dimension_numbers = #tpu.dot_dimension_numbers<[1], [0], [0], [1], [0, 0, 1, 1], [], []>} : vector<8x32xbf16>, vector<32x96xbf16>, vector<8x96xf32> -> vector<8x96xf32>
    %16 = vector.broadcast %4 : vector<1x96xf32> to vector<8x96xf32>
    %17 = arith.addf %15, %16 : vector<8x96xf32>
    %18 = vector.extract_strided_slice %17 {offsets = [0, 0], sizes = [8, 16], strides = [1, 1]} : vector<8x96xf32> to vector<8x16xf32>
    %19 = vector.extract_strided_slice %17 {offsets = [0, 32], sizes = [8, 16], strides = [1, 1]} : vector<8x96xf32> to vector<8x16xf32>
    %20 = vector.extract_strided_slice %17 {offsets = [0, 64], sizes = [8, 16], strides = [1, 1]} : vector<8x96xf32> to vector<8x16xf32>
    %21 = arith.truncf %18 : vector<8x16xf32> to vector<8x16xbf16>
    %22 = arith.truncf %19 : vector<8x16xf32> to vector<8x16xbf16>
    %cst_8 = arith.constant dense<0.000000e+00> : vector<8x8xf32>
    %23 = tpu.matmul %21, %22, %cst_8 {dimension_numbers = #tpu.dot_dimension_numbers<[1], [1], [0], [0], [0, 0, 1, 0], [], []>} : vector<8x16xbf16>, vector<8x16xbf16>, vector<8x8xf32> -> vector<8x8xf32>
    %cst_9 = arith.constant dense<0xFF800000> : vector<8xf32>
    %24 = vector.multi_reduction <maximumf>, %23, %cst_9 [1] : vector<8x8xf32> to vector<8xf32>
    %25 = vector.shape_cast %24 : vector<8xf32> to vector<8x1xf32>
    %26 = vector.broadcast %25 : vector<8x1xf32> to vector<8x8xf32>
    %27 = arith.subf %23, %26 : vector<8x8xf32>
    %28 = math.exp %27 : vector<8x8xf32>
    %cst_10 = arith.constant dense<0.000000e+00> : vector<8xf32>
    %29 = vector.multi_reduction <add>, %28, %cst_10 [1] : vector<8x8xf32> to vector<8xf32>
    %30 = vector.shape_cast %29 : vector<8xf32> to vector<8x1xf32>
    %31 = tpu.reciprocal %30 {approx = true} : vector<8x1xf32> -> vector<8x1xf32>
    %32 = vector.broadcast %31 : vector<8x1xf32> to vector<8x8xf32>
    %33 = arith.mulf %28, %32 : vector<8x8xf32>
    %34 = arith.truncf %33 : vector<8x8xf32> to vector<8x8xbf16>
    %35 = arith.truncf %20 : vector<8x16xf32> to vector<8x16xbf16>
    %cst_11 = arith.constant dense<0.000000e+00> : vector<8x16xf32>
    %36 = tpu.matmul %34, %35, %cst_11 {dimension_numbers = #tpu.dot_dimension_numbers<[1], [0], [0], [1], [0, 0, 1, 1], [], []>} : vector<8x8xbf16>, vector<8x16xbf16>, vector<8x16xf32> -> vector<8x16xf32>
    %37 = vector.extract_strided_slice %17 {offsets = [0, 16], sizes = [8, 16], strides = [1, 1]} : vector<8x96xf32> to vector<8x16xf32>
    %38 = vector.extract_strided_slice %17 {offsets = [0, 48], sizes = [8, 16], strides = [1, 1]} : vector<8x96xf32> to vector<8x16xf32>
    %39 = vector.extract_strided_slice %17 {offsets = [0, 80], sizes = [8, 16], strides = [1, 1]} : vector<8x96xf32> to vector<8x16xf32>
    %40 = arith.truncf %37 : vector<8x16xf32> to vector<8x16xbf16>
    %41 = arith.truncf %38 : vector<8x16xf32> to vector<8x16xbf16>
    %cst_12 = arith.constant dense<0.000000e+00> : vector<8x8xf32>
    %42 = tpu.matmul %40, %41, %cst_12 {dimension_numbers = #tpu.dot_dimension_numbers<[1], [1], [0], [0], [0, 0, 1, 0], [], []>} : vector<8x16xbf16>, vector<8x16xbf16>, vector<8x8xf32> -> vector<8x8xf32>
    %cst_13 = arith.constant dense<0xFF800000> : vector<8xf32>
    %43 = vector.multi_reduction <maximumf>, %42, %cst_13 [1] : vector<8x8xf32> to vector<8xf32>
    %44 = vector.shape_cast %43 : vector<8xf32> to vector<8x1xf32>
    %45 = vector.broadcast %44 : vector<8x1xf32> to vector<8x8xf32>
    %46 = arith.subf %42, %45 : vector<8x8xf32>
    %47 = math.exp %46 : vector<8x8xf32>
    %cst_14 = arith.constant dense<0.000000e+00> : vector<8xf32>
    %48 = vector.multi_reduction <add>, %47, %cst_14 [1] : vector<8x8xf32> to vector<8xf32>
    %49 = vector.shape_cast %48 : vector<8xf32> to vector<8x1xf32>
    %50 = tpu.reciprocal %49 {approx = true} : vector<8x1xf32> -> vector<8x1xf32>
    %51 = vector.broadcast %50 : vector<8x1xf32> to vector<8x8xf32>
    %52 = arith.mulf %47, %51 : vector<8x8xf32>
    %53 = arith.truncf %52 : vector<8x8xf32> to vector<8x8xbf16>
    %54 = arith.truncf %39 : vector<8x16xf32> to vector<8x16xbf16>
    %cst_15 = arith.constant dense<0.000000e+00> : vector<8x16xf32>
    %55 = tpu.matmul %53, %54, %cst_15 {dimension_numbers = #tpu.dot_dimension_numbers<[1], [0], [0], [1], [0, 0, 1, 1], [], []>} : vector<8x8xbf16>, vector<8x16xbf16>, vector<8x16xf32> -> vector<8x16xf32>
    %56 = tpu.concatenate %36, %55 in 1 : vector<8x16xf32>, vector<8x16xf32> -> vector<8x32xf32>
    %57 = arith.truncf %56 : vector<8x32xf32> to vector<8x32xbf16>
    %c0_16 = arith.constant 0 : index
    %c0_17 = arith.constant 0 : index
    %c0_18 = arith.constant 0 : index
    %58 = vector.load %arg3[%c0_16, %c0_17, %c0_18] : memref<2x32x32xbf16, #tpu.memory_space<vmem>>, vector<1x32x32xbf16>
    %59 = vector.shape_cast %58 : vector<1x32x32xbf16> to vector<32x32xbf16>
    %cst_19 = arith.constant dense<0.000000e+00> : vector<8x32xf32>
    %60 = tpu.matmul %57, %59, %cst_19 {dimension_numbers = #tpu.dot_dimension_numbers<[1], [0], [0], [1], [0, 0, 1, 1], [], []>} : vector<8x32xbf16>, vector<32x32xbf16>, vector<8x32xf32> -> vector<8x32xf32>
    %61 = vector.broadcast %5 : vector<1x32xf32> to vector<8x32xf32>
    %62 = arith.addf %60, %61 : vector<8x32xf32>
    %63 = arith.addf %1, %62 : vector<8x32xf32>
    %cst_20 = arith.constant dense<0.000000e+00> : vector<8xf32>
    %64 = vector.multi_reduction <add>, %63, %cst_20 [1] : vector<8x32xf32> to vector<8xf32>
    %65 = vector.shape_cast %64 : vector<8xf32> to vector<8x1xf32>
    %cst_21 = arith.constant 3.200000e+01 : f32
    %66 = vector.broadcast %cst_21 : f32 to vector<8x1xf32>
    %67 = arith.divf %65, %66 : vector<8x1xf32>
    %68 = vector.broadcast %67 : vector<8x1xf32> to vector<8x32xf32>
    %69 = arith.subf %63, %68 : vector<8x32xf32>
    %70 = arith.mulf %69, %69 : vector<8x32xf32>
    %cst_22 = arith.constant dense<0.000000e+00> : vector<8xf32>
    %71 = vector.multi_reduction <add>, %70, %cst_22 [1] : vector<8x32xf32> to vector<8xf32>
    %72 = vector.shape_cast %71 : vector<8xf32> to vector<8x1xf32>
    %cst_23 = arith.constant 3.200000e+01 : f32
    %73 = vector.broadcast %cst_23 : f32 to vector<8x1xf32>
    %74 = arith.divf %72, %73 : vector<8x1xf32>
    %75 = vector.broadcast %67 : vector<8x1xf32> to vector<8x32xf32>
    %76 = arith.subf %63, %75 : vector<8x32xf32>
    %cst_24 = arith.constant 9.99999996E-13 : f32
    %77 = vector.broadcast %cst_24 : f32 to vector<8x1xf32>
    %78 = arith.addf %74, %77 : vector<8x1xf32>
    %79 = math.rsqrt %78 : vector<8x1xf32>
    %80 = vector.broadcast %79 : vector<8x1xf32> to vector<8x32xf32>
    %81 = arith.mulf %76, %80 : vector<8x32xf32>
    %82 = vector.broadcast %6 : vector<1x32xf32> to vector<8x32xf32>
    %83 = arith.mulf %81, %82 : vector<8x32xf32>
    %84 = vector.broadcast %7 : vector<1x32xf32> to vector<8x32xf32>
    %85 = arith.addf %83, %84 : vector<8x32xf32>
    %86 = arith.truncf %85 : vector<8x32xf32> to vector<8x32xbf16>
    %c0_25 = arith.constant 0 : index
    %c0_26 = arith.constant 0 : index
    %c0_27 = arith.constant 0 : index
    %87 = vector.load %arg4[%c0_25, %c0_26, %c0_27] : memref<2x32x64xbf16, #tpu.memory_space<vmem>>, vector<1x32x64xbf16>
    %88 = vector.shape_cast %87 : vector<1x32x64xbf16> to vector<32x64xbf16>
    %cst_28 = arith.constant dense<0.000000e+00> : vector<8x64xf32>
    %89 = tpu.matmul %86, %88, %cst_28 {dimension_numbers = #tpu.dot_dimension_numbers<[1], [0], [0], [1], [0, 0, 1, 1], [], []>} : vector<8x32xbf16>, vector<32x64xbf16>, vector<8x64xf32> -> vector<8x64xf32>
    %90 = vector.broadcast %8 : vector<1x64xf32> to vector<8x64xf32>
    %91 = arith.addf %89, %90 : vector<8x64xf32>
    %cst_29 = arith.constant 5.000000e-01 : f32
    %92 = vector.broadcast %cst_29 : f32 to vector<8x64xf32>
    %93 = arith.mulf %92, %91 : vector<8x64xf32>
    %cst_30 = arith.constant 4.471500e-02 : f32
    %94 = vector.broadcast %cst_30 : f32 to vector<8x64xf32>
    %95 = arith.mulf %94, %91 : vector<8x64xf32>
    %96 = arith.mulf %95, %91 : vector<8x64xf32>
    %97 = arith.mulf %96, %91 : vector<8x64xf32>
    %98 = arith.addf %91, %97 : vector<8x64xf32>
    %cst_31 = arith.constant 0.797884583 : f32
    %99 = vector.broadcast %cst_31 : f32 to vector<8x64xf32>
    %100 = arith.mulf %99, %98 : vector<8x64xf32>
    %101 = math.tanh %100 : vector<8x64xf32>
    %cst_32 = arith.constant 1.000000e+00 : f32
    %102 = vector.broadcast %cst_32 : f32 to vector<8x64xf32>
    %103 = arith.addf %102, %101 : vector<8x64xf32>
    %104 = arith.mulf %93, %103 : vector<8x64xf32>
    %105 = arith.truncf %104 : vector<8x64xf32> to vector<8x64xbf16>
    %c0_33 = arith.constant 0 : index
    %c0_34 = arith.constant 0 : index
    %c0_35 = arith.constant 0 : index
    %106 = vector.load %arg5[%c0_33, %c0_34, %c0_35] : memref<2x64x32xbf16, #tpu.memory_space<vmem>>, vector<1x64x32xbf16>
    %107 = vector.shape_cast %106 : vector<1x64x32xbf16> to vector<64x32xbf16>
    %cst_36 = arith.constant dense<0.000000e+00> : vector<8x32xf32>
    %108 = tpu.matmul %105, %107, %cst_36 {dimension_numbers = #tpu.dot_dimension_numbers<[1], [0], [0], [1], [0, 0, 1, 1], [], []>} : vector<8x64xbf16>, vector<64x32xbf16>, vector<8x32xf32> -> vector<8x32xf32>
    %109 = vector.broadcast %9 : vector<1x32xf32> to vector<8x32xf32>
    %110 = arith.addf %108, %109 : vector<8x32xf32>
    %111 = arith.addf %85, %110 : vector<8x32xf32>
    %cst_37 = arith.constant dense<0.000000e+00> : vector<8xf32>
    %112 = vector.multi_reduction <add>, %111, %cst_37 [1] : vector<8x32xf32> to vector<8xf32>
    %113 = vector.shape_cast %112 : vector<8xf32> to vector<8x1xf32>
    %cst_38 = arith.constant 3.200000e+01 : f32
    %114 = vector.broadcast %cst_38 : f32 to vector<8x1xf32>
    %115 = arith.divf %113, %114 : vector<8x1xf32>
    %116 = vector.broadcast %115 : vector<8x1xf32> to vector<8x32xf32>
    %117 = arith.subf %111, %116 : vector<8x32xf32>
    %118 = arith.mulf %117, %117 : vector<8x32xf32>
    %cst_39 = arith.constant dense<0.000000e+00> : vector<8xf32>
    %119 = vector.multi_reduction <add>, %118, %cst_39 [1] : vector<8x32xf32> to vector<8xf32>
    %120 = vector.shape_cast %119 : vector<8xf32> to vector<8x1xf32>
    %cst_40 = arith.constant 3.200000e+01 : f32
    %121 = vector.broadcast %cst_40 : f32 to vector<8x1xf32>
    %122 = arith.divf %120, %121 : vector<8x1xf32>
    %123 = vector.broadcast %115 : vector<8x1xf32> to vector<8x32xf32>
    %124 = arith.subf %111, %123 : vector<8x32xf32>
    %cst_41 = arith.constant 9.99999996E-13 : f32
    %125 = vector.broadcast %cst_41 : f32 to vector<8x1xf32>
    %126 = arith.addf %122, %125 : vector<8x1xf32>
    %127 = math.rsqrt %126 : vector<8x1xf32>
    %128 = vector.broadcast %127 : vector<8x1xf32> to vector<8x32xf32>
    %129 = arith.mulf %124, %128 : vector<8x32xf32>
    %130 = vector.broadcast %10 : vector<1x32xf32> to vector<8x32xf32>
    %131 = arith.mulf %129, %130 : vector<8x32xf32>
    %132 = vector.broadcast %11 : vector<1x32xf32> to vector<8x32xf32>
    %133 = arith.addf %131, %132 : vector<8x32xf32>
    %c1 = arith.constant 1 : index
    %c0_42 = arith.constant 0 : index
    %c0_43 = arith.constant 0 : index
    %134 = vector.load %arg6[%c1, %c0_42, %c0_43] : memref<2x8x96xf32, #tpu.memory_space<vmem>>, vector<1x8x96xf32>
    %135 = vector.shape_cast %134 : vector<1x8x96xf32> to vector<8x96xf32>
    %136 = vector.extract_strided_slice %135 {offsets = [0, 0], sizes = [1, 96], strides = [1, 1]} : vector<8x96xf32> to vector<1x96xf32>
    %137 = vector.extract_strided_slice %135 {offsets = [1, 0], sizes = [1, 32], strides = [1, 1]} : vector<8x96xf32> to vector<1x32xf32>
    %138 = vector.extract_strided_slice %135 {offsets = [2, 0], sizes = [1, 32], strides = [1, 1]} : vector<8x96xf32> to vector<1x32xf32>
    %139 = vector.extract_strided_slice %135 {offsets = [3, 0], sizes = [1, 32], strides = [1, 1]} : vector<8x96xf32> to vector<1x32xf32>
    %140 = vector.extract_strided_slice %135 {offsets = [4, 0], sizes = [1, 64], strides = [1, 1]} : vector<8x96xf32> to vector<1x64xf32>
    %141 = vector.extract_strided_slice %135 {offsets = [5, 0], sizes = [1, 32], strides = [1, 1]} : vector<8x96xf32> to vector<1x32xf32>
    %142 = vector.extract_strided_slice %135 {offsets = [6, 0], sizes = [1, 32], strides = [1, 1]} : vector<8x96xf32> to vector<1x32xf32>
    %143 = vector.extract_strided_slice %135 {offsets = [7, 0], sizes = [1, 32], strides = [1, 1]} : vector<8x96xf32> to vector<1x32xf32>
    %144 = arith.truncf %133 : vector<8x32xf32> to vector<8x32xbf16>
    %c1_44 = arith.constant 1 : index
    %c0_45 = arith.constant 0 : index
    %c0_46 = arith.constant 0 : index
    %145 = vector.load %arg2[%c1_44, %c0_45, %c0_46] : memref<2x32x96xbf16, #tpu.memory_space<vmem>>, vector<1x32x96xbf16>
    %146 = vector.shape_cast %145 : vector<1x32x96xbf16> to vector<32x96xbf16>
    %cst_47 = arith.constant dense<0.000000e+00> : vector<8x96xf32>
    %147 = tpu.matmul %144, %146, %cst_47 {dimension_numbers = #tpu.dot_dimension_numbers<[1], [0], [0], [1], [0, 0, 1, 1], [], []>} : vector<8x32xbf16>, vector<32x96xbf16>, vector<8x96xf32> -> vector<8x96xf32>
    %148 = vector.broadcast %136 : vector<1x96xf32> to vector<8x96xf32>
    %149 = arith.addf %147, %148 : vector<8x96xf32>
    %150 = vector.extract_strided_slice %149 {offsets = [0, 0], sizes = [8, 16], strides = [1, 1]} : vector<8x96xf32> to vector<8x16xf32>
    %151 = vector.extract_strided_slice %149 {offsets = [0, 32], sizes = [8, 16], strides = [1, 1]} : vector<8x96xf32> to vector<8x16xf32>
    %152 = vector.extract_strided_slice %149 {offsets = [0, 64], sizes = [8, 16], strides = [1, 1]} : vector<8x96xf32> to vector<8x16xf32>
    %153 = arith.truncf %150 : vector<8x16xf32> to vector<8x16xbf16>
    %154 = arith.truncf %151 : vector<8x16xf32> to vector<8x16xbf16>
    %cst_48 = arith.constant dense<0.000000e+00> : vector<8x8xf32>
    %155 = tpu.matmul %153, %154, %cst_48 {dimension_numbers = #tpu.dot_dimension_numbers<[1], [1], [0], [0], [0, 0, 1, 0], [], []>} : vector<8x16xbf16>, vector<8x16xbf16>, vector<8x8xf32> -> vector<8x8xf32>
    %cst_49 = arith.constant dense<0xFF800000> : vector<8xf32>
    %156 = vector.multi_reduction <maximumf>, %155, %cst_49 [1] : vector<8x8xf32> to vector<8xf32>
    %157 = vector.shape_cast %156 : vector<8xf32> to vector<8x1xf32>
    %158 = vector.broadcast %157 : vector<8x1xf32> to vector<8x8xf32>
    %159 = arith.subf %155, %158 : vector<8x8xf32>
    %160 = math.exp %159 : vector<8x8xf32>
    %cst_50 = arith.constant dense<0.000000e+00> : vector<8xf32>
    %161 = vector.multi_reduction <add>, %160, %cst_50 [1] : vector<8x8xf32> to vector<8xf32>
    %162 = vector.shape_cast %161 : vector<8xf32> to vector<8x1xf32>
    %163 = tpu.reciprocal %162 {approx = true} : vector<8x1xf32> -> vector<8x1xf32>
    %164 = vector.broadcast %163 : vector<8x1xf32> to vector<8x8xf32>
    %165 = arith.mulf %160, %164 : vector<8x8xf32>
    %166 = arith.truncf %165 : vector<8x8xf32> to vector<8x8xbf16>
    %167 = arith.truncf %152 : vector<8x16xf32> to vector<8x16xbf16>
    %cst_51 = arith.constant dense<0.000000e+00> : vector<8x16xf32>
    %168 = tpu.matmul %166, %167, %cst_51 {dimension_numbers = #tpu.dot_dimension_numbers<[1], [0], [0], [1], [0, 0, 1, 1], [], []>} : vector<8x8xbf16>, vector<8x16xbf16>, vector<8x16xf32> -> vector<8x16xf32>
    %169 = vector.extract_strided_slice %149 {offsets = [0, 16], sizes = [8, 16], strides = [1, 1]} : vector<8x96xf32> to vector<8x16xf32>
    %170 = vector.extract_strided_slice %149 {offsets = [0, 48], sizes = [8, 16], strides = [1, 1]} : vector<8x96xf32> to vector<8x16xf32>
    %171 = vector.extract_strided_slice %149 {offsets = [0, 80], sizes = [8, 16], strides = [1, 1]} : vector<8x96xf32> to vector<8x16xf32>
    %172 = arith.truncf %169 : vector<8x16xf32> to vector<8x16xbf16>
    %173 = arith.truncf %170 : vector<8x16xf32> to vector<8x16xbf16>
    %cst_52 = arith.constant dense<0.000000e+00> : vector<8x8xf32>
    %174 = tpu.matmul %172, %173, %cst_52 {dimension_numbers = #tpu.dot_dimension_numbers<[1], [1], [0], [0], [0, 0, 1, 0], [], []>} : vector<8x16xbf16>, vector<8x16xbf16>, vector<8x8xf32> -> vector<8x8xf32>
    %cst_53 = arith.constant dense<0xFF800000> : vector<8xf32>
    %175 = vector.multi_reduction <maximumf>, %174, %cst_53 [1] : vector<8x8xf32> to vector<8xf32>
    %176 = vector.shape_cast %175 : vector<8xf32> to vector<8x1xf32>
    %177 = vector.broadcast %176 : vector<8x1xf32> to vector<8x8xf32>
    %178 = arith.subf %174, %177 : vector<8x8xf32>
    %179 = math.exp %178 : vector<8x8xf32>
    %cst_54 = arith.constant dense<0.000000e+00> : vector<8xf32>
    %180 = vector.multi_reduction <add>, %179, %cst_54 [1] : vector<8x8xf32> to vector<8xf32>
    %181 = vector.shape_cast %180 : vector<8xf32> to vector<8x1xf32>
    %182 = tpu.reciprocal %181 {approx = true} : vector<8x1xf32> -> vector<8x1xf32>
    %183 = vector.broadcast %182 : vector<8x1xf32> to vector<8x8xf32>
    %184 = arith.mulf %179, %183 : vector<8x8xf32>
    %185 = arith.truncf %184 : vector<8x8xf32> to vector<8x8xbf16>
    %186 = arith.truncf %171 : vector<8x16xf32> to vector<8x16xbf16>
    %cst_55 = arith.constant dense<0.000000e+00> : vector<8x16xf32>
    %187 = tpu.matmul %185, %186, %cst_55 {dimension_numbers = #tpu.dot_dimension_numbers<[1], [0], [0], [1], [0, 0, 1, 1], [], []>} : vector<8x8xbf16>, vector<8x16xbf16>, vector<8x16xf32> -> vector<8x16xf32>
    %188 = tpu.concatenate %168, %187 in 1 : vector<8x16xf32>, vector<8x16xf32> -> vector<8x32xf32>
    %189 = arith.truncf %188 : vector<8x32xf32> to vector<8x32xbf16>
    %c1_56 = arith.constant 1 : index
    %c0_57 = arith.constant 0 : index
    %c0_58 = arith.constant 0 : index
    %190 = vector.load %arg3[%c1_56, %c0_57, %c0_58] : memref<2x32x32xbf16, #tpu.memory_space<vmem>>, vector<1x32x32xbf16>
    %191 = vector.shape_cast %190 : vector<1x32x32xbf16> to vector<32x32xbf16>
    %cst_59 = arith.constant dense<0.000000e+00> : vector<8x32xf32>
    %192 = tpu.matmul %189, %191, %cst_59 {dimension_numbers = #tpu.dot_dimension_numbers<[1], [0], [0], [1], [0, 0, 1, 1], [], []>} : vector<8x32xbf16>, vector<32x32xbf16>, vector<8x32xf32> -> vector<8x32xf32>
    %193 = vector.broadcast %137 : vector<1x32xf32> to vector<8x32xf32>
    %194 = arith.addf %192, %193 : vector<8x32xf32>
    %195 = arith.addf %133, %194 : vector<8x32xf32>
    %cst_60 = arith.constant dense<0.000000e+00> : vector<8xf32>
    %196 = vector.multi_reduction <add>, %195, %cst_60 [1] : vector<8x32xf32> to vector<8xf32>
    %197 = vector.shape_cast %196 : vector<8xf32> to vector<8x1xf32>
    %cst_61 = arith.constant 3.200000e+01 : f32
    %198 = vector.broadcast %cst_61 : f32 to vector<8x1xf32>
    %199 = arith.divf %197, %198 : vector<8x1xf32>
    %200 = vector.broadcast %199 : vector<8x1xf32> to vector<8x32xf32>
    %201 = arith.subf %195, %200 : vector<8x32xf32>
    %202 = arith.mulf %201, %201 : vector<8x32xf32>
    %cst_62 = arith.constant dense<0.000000e+00> : vector<8xf32>
    %203 = vector.multi_reduction <add>, %202, %cst_62 [1] : vector<8x32xf32> to vector<8xf32>
    %204 = vector.shape_cast %203 : vector<8xf32> to vector<8x1xf32>
    %cst_63 = arith.constant 3.200000e+01 : f32
    %205 = vector.broadcast %cst_63 : f32 to vector<8x1xf32>
    %206 = arith.divf %204, %205 : vector<8x1xf32>
    %207 = vector.broadcast %199 : vector<8x1xf32> to vector<8x32xf32>
    %208 = arith.subf %195, %207 : vector<8x32xf32>
    %cst_64 = arith.constant 9.99999996E-13 : f32
    %209 = vector.broadcast %cst_64 : f32 to vector<8x1xf32>
    %210 = arith.addf %206, %209 : vector<8x1xf32>
    %211 = math.rsqrt %210 : vector<8x1xf32>
    %212 = vector.broadcast %211 : vector<8x1xf32> to vector<8x32xf32>
    %213 = arith.mulf %208, %212 : vector<8x32xf32>
    %214 = vector.broadcast %138 : vector<1x32xf32> to vector<8x32xf32>
    %215 = arith.mulf %213, %214 : vector<8x32xf32>
    %216 = vector.broadcast %139 : vector<1x32xf32> to vector<8x32xf32>
    %217 = arith.addf %215, %216 : vector<8x32xf32>
    %218 = arith.truncf %217 : vector<8x32xf32> to vector<8x32xbf16>
    %c1_65 = arith.constant 1 : index
    %c0_66 = arith.constant 0 : index
    %c0_67 = arith.constant 0 : index
    %219 = vector.load %arg4[%c1_65, %c0_66, %c0_67] : memref<2x32x64xbf16, #tpu.memory_space<vmem>>, vector<1x32x64xbf16>
    %220 = vector.shape_cast %219 : vector<1x32x64xbf16> to vector<32x64xbf16>
    %cst_68 = arith.constant dense<0.000000e+00> : vector<8x64xf32>
    %221 = tpu.matmul %218, %220, %cst_68 {dimension_numbers = #tpu.dot_dimension_numbers<[1], [0], [0], [1], [0, 0, 1, 1], [], []>} : vector<8x32xbf16>, vector<32x64xbf16>, vector<8x64xf32> -> vector<8x64xf32>
    %222 = vector.broadcast %140 : vector<1x64xf32> to vector<8x64xf32>
    %223 = arith.addf %221, %222 : vector<8x64xf32>
    %cst_69 = arith.constant 5.000000e-01 : f32
    %224 = vector.broadcast %cst_69 : f32 to vector<8x64xf32>
    %225 = arith.mulf %224, %223 : vector<8x64xf32>
    %cst_70 = arith.constant 4.471500e-02 : f32
    %226 = vector.broadcast %cst_70 : f32 to vector<8x64xf32>
    %227 = arith.mulf %226, %223 : vector<8x64xf32>
    %228 = arith.mulf %227, %223 : vector<8x64xf32>
    %229 = arith.mulf %228, %223 : vector<8x64xf32>
    %230 = arith.addf %223, %229 : vector<8x64xf32>
    %cst_71 = arith.constant 0.797884583 : f32
    %231 = vector.broadcast %cst_71 : f32 to vector<8x64xf32>
    %232 = arith.mulf %231, %230 : vector<8x64xf32>
    %233 = math.tanh %232 : vector<8x64xf32>
    %cst_72 = arith.constant 1.000000e+00 : f32
    %234 = vector.broadcast %cst_72 : f32 to vector<8x64xf32>
    %235 = arith.addf %234, %233 : vector<8x64xf32>
    %236 = arith.mulf %225, %235 : vector<8x64xf32>
    %237 = arith.truncf %236 : vector<8x64xf32> to vector<8x64xbf16>
    %c1_73 = arith.constant 1 : index
    %c0_74 = arith.constant 0 : index
    %c0_75 = arith.constant 0 : index
    %238 = vector.load %arg5[%c1_73, %c0_74, %c0_75] : memref<2x64x32xbf16, #tpu.memory_space<vmem>>, vector<1x64x32xbf16>
    %239 = vector.shape_cast %238 : vector<1x64x32xbf16> to vector<64x32xbf16>
    %cst_76 = arith.constant dense<0.000000e+00> : vector<8x32xf32>
    %240 = tpu.matmul %237, %239, %cst_76 {dimension_numbers = #tpu.dot_dimension_numbers<[1], [0], [0], [1], [0, 0, 1, 1], [], []>} : vector<8x64xbf16>, vector<64x32xbf16>, vector<8x32xf32> -> vector<8x32xf32>
    %241 = vector.broadcast %141 : vector<1x32xf32> to vector<8x32xf32>
    %242 = arith.addf %240, %241 : vector<8x32xf32>
    %243 = arith.addf %217, %242 : vector<8x32xf32>
    %cst_77 = arith.constant dense<0.000000e+00> : vector<8xf32>
    %244 = vector.multi_reduction <add>, %243, %cst_77 [1] : vector<8x32xf32> to vector<8xf32>
    %245 = vector.shape_cast %244 : vector<8xf32> to vector<8x1xf32>
    %cst_78 = arith.constant 3.200000e+01 : f32
    %246 = vector.broadcast %cst_78 : f32 to vector<8x1xf32>
    %247 = arith.divf %245, %246 : vector<8x1xf32>
    %248 = vector.broadcast %247 : vector<8x1xf32> to vector<8x32xf32>
    %249 = arith.subf %243, %248 : vector<8x32xf32>
    %250 = arith.mulf %249, %249 : vector<8x32xf32>
    %cst_79 = arith.constant dense<0.000000e+00> : vector<8xf32>
    %251 = vector.multi_reduction <add>, %250, %cst_79 [1] : vector<8x32xf32> to vector<8xf32>
    %252 = vector.shape_cast %251 : vector<8xf32> to vector<8x1xf32>
    %cst_80 = arith.constant 3.200000e+01 : f32
    %253 = vector.broadcast %cst_80 : f32 to vector<8x1xf32>
    %254 = arith.divf %252, %253 : vector<8x1xf32>
    %255 = vector.broadcast %247 : vector<8x1xf32> to vector<8x32xf32>
    %256 = arith.subf %243, %255 : vector<8x32xf32>
    %cst_81 = arith.constant 9.99999996E-13 : f32
    %257 = vector.broadcast %cst_81 : f32 to vector<8x1xf32>
    %258 = arith.addf %254, %257 : vector<8x1xf32>
    %259 = math.rsqrt %258 : vector<8x1xf32>
    %260 = vector.broadcast %259 : vector<8x1xf32> to vector<8x32xf32>
    %261 = arith.mulf %256, %260 : vector<8x32xf32>
    %262 = vector.broadcast %142 : vector<1x32xf32> to vector<8x32xf32>
    %263 = arith.mulf %261, %262 : vector<8x32xf32>
    %264 = vector.broadcast %143 : vector<1x32xf32> to vector<8x32xf32>
    %265 = arith.addf %263, %264 : vector<8x32xf32>
    %266 = vector.extract_strided_slice %265 {offsets = [0, 0], sizes = [1, 32], strides = [1, 1]} : vector<8x32xf32> to vector<1x32xf32>
    %267 = arith.truncf %266 : vector<1x32xf32> to vector<1x32xbf16>
    %c0_82 = arith.constant 0 : index
    %c0_83 = arith.constant 0 : index
    %268 = vector.load %arg7[%c0_82, %c0_83] : memref<32x128xbf16, #tpu.memory_space<vmem>>, vector<32x128xbf16>
    %cst_84 = arith.constant dense<0.000000e+00> : vector<1x128xf32>
    %269 = tpu.matmul %267, %268, %cst_84 {dimension_numbers = #tpu.dot_dimension_numbers<[1], [0], [0], [1], [0, 0, 1, 1], [], []>} : vector<1x32xbf16>, vector<32x128xbf16>, vector<1x128xf32> -> vector<1x128xf32>
    %270 = tpu.iota {dimensions = array<i32: 1>} : vector<1x128xi32>
    %c64_i32 = arith.constant 64 : i32
    %271 = vector.broadcast %c64_i32 : i32 to vector<1x128xi32>
    %272 = arith.cmpi slt, %270, %271 : vector<1x128xi32>
    %cst_85 = arith.constant -1.000000e+30 : f32
    %273 = vector.broadcast %cst_85 : f32 to vector<1x128xf32>
    %274 = arith.select %272, %269, %273 : vector<1x128xi1>, vector<1x128xf32>
    %c0_i32 = arith.constant 0 : i32
    %275 = vector.broadcast %c0_i32 : i32 to vector<1x128xi32>
    %cst_86 = arith.constant dense<0xFF800000> : vector<1xf32>
    %276 = vector.multi_reduction <maximumf>, %274, %cst_86 [1] : vector<1x128xf32> to vector<1xf32>
    %277 = vector.shape_cast %276 : vector<1xf32> to vector<1x1xf32>
    %278 = vector.broadcast %277 : vector<1x1xf32> to vector<1x128xf32>
    %279 = arith.cmpf oge, %274, %278 : vector<1x128xf32>
    %c128_i32 = arith.constant 128 : i32
    %280 = vector.broadcast %c128_i32 : i32 to vector<1x128xi32>
    %281 = arith.select %279, %270, %280 : vector<1x128xi1>, vector<1x128xi32>
    %cst_87 = arith.constant dense<2147483647> : vector<1xi32>
    %282 = vector.multi_reduction <minsi>, %281, %cst_87 [1] : vector<1x128xi32> to vector<1xi32>
    %283 = vector.shape_cast %282 : vector<1xi32> to vector<1x1xi32>
    %c0_i32_88 = arith.constant 0 : i32
    %284 = vector.broadcast %c0_i32_88 : i32 to vector<1x128xi32>
    %285 = arith.cmpi eq, %270, %284 : vector<1x128xi32>
    %286 = vector.shape_cast %283 : vector<1x1xi32> to vector<1x1xi32>
    %287 = vector.broadcast %286 : vector<1x1xi32> to vector<1x128xi32>
    %288 = arith.select %285, %287, %275 : vector<1x128xi1>, vector<1x128xi32>
    %289 = vector.broadcast %283 : vector<1x1xi32> to vector<1x128xi32>
    %290 = arith.cmpi eq, %270, %289 : vector<1x128xi32>
    %cst_89 = arith.constant -1.000000e+30 : f32
    %291 = vector.broadcast %cst_89 : f32 to vector<1x128xf32>
    %292 = arith.select %290, %291, %274 : vector<1x128xi1>, vector<1x128xf32>
    %cst_90 = arith.constant dense<0xFF800000> : vector<1xf32>
    %293 = vector.multi_reduction <maximumf>, %292, %cst_90 [1] : vector<1x128xf32> to vector<1xf32>
    %294 = vector.shape_cast %293 : vector<1xf32> to vector<1x1xf32>
    %295 = vector.broadcast %294 : vector<1x1xf32> to vector<1x128xf32>
    %296 = arith.cmpf oge, %292, %295 : vector<1x128xf32>
    %c128_i32_91 = arith.constant 128 : i32
    %297 = vector.broadcast %c128_i32_91 : i32 to vector<1x128xi32>
    %298 = arith.select %296, %270, %297 : vector<1x128xi1>, vector<1x128xi32>
    %cst_92 = arith.constant dense<2147483647> : vector<1xi32>
    %299 = vector.multi_reduction <minsi>, %298, %cst_92 [1] : vector<1x128xi32> to vector<1xi32>
    %300 = vector.shape_cast %299 : vector<1xi32> to vector<1x1xi32>
    %c1_i32 = arith.constant 1 : i32
    %301 = vector.broadcast %c1_i32 : i32 to vector<1x128xi32>
    %302 = arith.cmpi eq, %270, %301 : vector<1x128xi32>
    %303 = vector.shape_cast %300 : vector<1x1xi32> to vector<1x1xi32>
    %304 = vector.broadcast %303 : vector<1x1xi32> to vector<1x128xi32>
    %305 = arith.select %302, %304, %288 : vector<1x128xi1>, vector<1x128xi32>
    %306 = vector.broadcast %300 : vector<1x1xi32> to vector<1x128xi32>
    %307 = arith.cmpi eq, %270, %306 : vector<1x128xi32>
    %cst_93 = arith.constant -1.000000e+30 : f32
    %308 = vector.broadcast %cst_93 : f32 to vector<1x128xf32>
    %309 = arith.select %307, %308, %292 : vector<1x128xi1>, vector<1x128xf32>
    %cst_94 = arith.constant dense<0xFF800000> : vector<1xf32>
    %310 = vector.multi_reduction <maximumf>, %309, %cst_94 [1] : vector<1x128xf32> to vector<1xf32>
    %311 = vector.shape_cast %310 : vector<1xf32> to vector<1x1xf32>
    %312 = vector.broadcast %311 : vector<1x1xf32> to vector<1x128xf32>
    %313 = arith.cmpf oge, %309, %312 : vector<1x128xf32>
    %c128_i32_95 = arith.constant 128 : i32
    %314 = vector.broadcast %c128_i32_95 : i32 to vector<1x128xi32>
    %315 = arith.select %313, %270, %314 : vector<1x128xi1>, vector<1x128xi32>
    %cst_96 = arith.constant dense<2147483647> : vector<1xi32>
    %316 = vector.multi_reduction <minsi>, %315, %cst_96 [1] : vector<1x128xi32> to vector<1xi32>
    %317 = vector.shape_cast %316 : vector<1xi32> to vector<1x1xi32>
    %c2_i32 = arith.constant 2 : i32
    %318 = vector.broadcast %c2_i32 : i32 to vector<1x128xi32>
    %319 = arith.cmpi eq, %270, %318 : vector<1x128xi32>
    %320 = vector.shape_cast %317 : vector<1x1xi32> to vector<1x1xi32>
    %321 = vector.broadcast %320 : vector<1x1xi32> to vector<1x128xi32>
    %322 = arith.select %319, %321, %305 : vector<1x128xi1>, vector<1x128xi32>
    %323 = vector.broadcast %317 : vector<1x1xi32> to vector<1x128xi32>
    %324 = arith.cmpi eq, %270, %323 : vector<1x128xi32>
    %cst_97 = arith.constant -1.000000e+30 : f32
    %325 = vector.broadcast %cst_97 : f32 to vector<1x128xf32>
    %326 = arith.select %324, %325, %309 : vector<1x128xi1>, vector<1x128xf32>
    %cst_98 = arith.constant dense<0xFF800000> : vector<1xf32>
    %327 = vector.multi_reduction <maximumf>, %326, %cst_98 [1] : vector<1x128xf32> to vector<1xf32>
    %328 = vector.shape_cast %327 : vector<1xf32> to vector<1x1xf32>
    %329 = vector.broadcast %328 : vector<1x1xf32> to vector<1x128xf32>
    %330 = arith.cmpf oge, %326, %329 : vector<1x128xf32>
    %c128_i32_99 = arith.constant 128 : i32
    %331 = vector.broadcast %c128_i32_99 : i32 to vector<1x128xi32>
    %332 = arith.select %330, %270, %331 : vector<1x128xi1>, vector<1x128xi32>
    %cst_100 = arith.constant dense<2147483647> : vector<1xi32>
    %333 = vector.multi_reduction <minsi>, %332, %cst_100 [1] : vector<1x128xi32> to vector<1xi32>
    %334 = vector.shape_cast %333 : vector<1xi32> to vector<1x1xi32>
    %c3_i32 = arith.constant 3 : i32
    %335 = vector.broadcast %c3_i32 : i32 to vector<1x128xi32>
    %336 = arith.cmpi eq, %270, %335 : vector<1x128xi32>
    %337 = vector.shape_cast %334 : vector<1x1xi32> to vector<1x1xi32>
    %338 = vector.broadcast %337 : vector<1x1xi32> to vector<1x128xi32>
    %339 = arith.select %336, %338, %322 : vector<1x128xi1>, vector<1x128xi32>
    %c0_101 = arith.constant 0 : index
    %c0_102 = arith.constant 0 : index
    %c0_103 = arith.constant 0 : index
    %340 = vector.load %arg8[%c0_101, %c0_102, %c0_103] : memref<1x1x128xi32, #tpu.memory_space<vmem>>, vector<1x1x128xi32>
    %341 = vector.shape_cast %340 : vector<1x1x128xi32> to vector<1x128xi32>
    %342 = vector.shape_cast %339 : vector<1x128xi32> to vector<1x1x128xi32>
    tpu.vector_store %arg8[%c0_101, %c0_102, %c0_103], %342 {strides = array<i32>} : memref<1x1x128xi32, #tpu.memory_space<vmem>>, vector<1x1x128xi32>,
    return
  }
  func.func @transform_0(%arg0: i32) -> (i32, i32, i32) {
    %c0_i32 = arith.constant 0 : i32
    %c0_i32_0 = arith.constant 0 : i32
    %c0_i32_1 = arith.constant 0 : i32
    return %arg0, %c0_i32, %c0_i32_0 : i32, i32, i32
  }
  func.func @transform_1(%arg0: i32) -> (i32, i32, i32) {
    %c0_i32 = arith.constant 0 : i32
    %c0_i32_0 = arith.constant 0 : i32
    %c0_i32_1 = arith.constant 0 : i32
    %c0_i32_2 = arith.constant 0 : i32
    return %c0_i32, %c0_i32_0, %c0_i32_1 : i32, i32, i32
  }
  func.func @transform_2(%arg0: i32) -> (i32, i32, i32) {
    %c0_i32 = arith.constant 0 : i32
    %c0_i32_0 = arith.constant 0 : i32
    %c0_i32_1 = arith.constant 0 : i32
    %c0_i32_2 = arith.constant 0 : i32
    return %c0_i32, %c0_i32_0, %c0_i32_1 : i32, i32, i32
  }
  func.func @transform_3(%arg0: i32) -> (i32, i32, i32) {
    %c0_i32 = arith.constant 0 : i32
    %c0_i32_0 = arith.constant 0 : i32
    %c0_i32_1 = arith.constant 0 : i32
    %c0_i32_2 = arith.constant 0 : i32
    return %c0_i32, %c0_i32_0, %c0_i32_1 : i32, i32, i32
  }
  func.func @transform_4(%arg0: i32) -> (i32, i32, i32) {
    %c0_i32 = arith.constant 0 : i32
    %c0_i32_0 = arith.constant 0 : i32
    %c0_i32_1 = arith.constant 0 : i32
    %c0_i32_2 = arith.constant 0 : i32
    return %c0_i32, %c0_i32_0, %c0_i32_1 : i32, i32, i32
  }
  func.func @transform_5(%arg0: i32) -> (i32, i32, i32) {
    %c0_i32 = arith.constant 0 : i32
    %c0_i32_0 = arith.constant 0 : i32
    %c0_i32_1 = arith.constant 0 : i32
    %c0_i32_2 = arith.constant 0 : i32
    return %c0_i32, %c0_i32_0, %c0_i32_1 : i32, i32, i32
  }
  func.func @transform_6(%arg0: i32) -> (i32, i32) {
    %c0_i32 = arith.constant 0 : i32
    %c0_i32_0 = arith.constant 0 : i32
    %c0_i32_1 = arith.constant 0 : i32
    return %c0_i32, %c0_i32_0 : i32, i32
  }
  func.func @transform_7(%arg0: i32) -> (i32, i32, i32) {
    %c0_i32 = arith.constant 0 : i32
    %c0_i32_0 = arith.constant 0 : i32
    %c0_i32_1 = arith.constant 0 : i32
    return %arg0, %c0_i32, %c0_i32_0 : i32, i32, i32
  }
}

</mosaic_0001>

<bundles_post_ra>
// kernel: tpu_custom_call.1
= control target key start
LH: loop header
LB: loop body
LE: loop exit
PB: predicated region body
PF: predicated region fallthrough
CT: control target
= control target key end

     0   :  { %s2050_s0 = inlined_call_operand.hbm [shape: f32[2,8,32], index: 0, kind: input, shape index: {}]   ;;  %s2051_s1 = inlined_call_operand.vmem [shape: bf16[2,32,96], index: 1, kind: input, shape index: {}]   ;;  %s2052_s2 = inlined_call_operand.vmem [shape: bf16[2,32,32], index: 2, kind: input, shape index: {}]   ;;  %s2053_s3 = inlined_call_operand.vmem [shape: bf16[2,32,64], index: 3, kind: input, shape index: {}]   ;;  %s2054_s4 = inlined_call_operand.vmem [shape: bf16[2,64,32], index: 4, kind: input, shape index: {}]   ;;  %s2055_s5 = inlined_call_operand.hbm [shape: f32[2,8,96], index: 5, kind: input, shape index: {}]   ;;  %s2056_s6 = inlined_call_operand.hbm [shape: bf16[32,128], index: 6, kind: input, shape index: {}]   ;;  %s2057_s7 = inlined_call_operand.hbm [shape: s32[2,1,128], index: 7, kind: output, shape index: {}]  }
   0x1   :  { %2058 = sst [smem:[#allocation12_spill]] %s2055_s5 }
   0x2   :  { %2059 = sst [smem:[#allocation13_spill]] %s2056_s6 }
   0x3   :  { %12 = vsyncpa [#allocation3], 0 }
   0x4   :  { %14 = vsyncpa [#allocation3 + $0x1], 0 }
   0x5   :  { %15 = vsyncpa [#allocation6], 0 }
   0x6   :  { %16 = vsyncpa [#allocation4], 0 }
   0x7   :  { %18 = vsyncpa [#allocation4 + $0x1], 0  ;;  %s1727_s24 = smov 0   ;;  %s1729_s25 = smov 0  }
   0x8   :  { %s1731_s26 = smov 0   ;;  %s1733_s27 = smov 0  }
   0x9 LB: > { %s2060_s5 = sld [smem:[#allocation12_spill]]  ;;  %s1751_s8 = sadd.s32 4294967295, %s1672_s27   ;;  %s1672_s27 = sphi %s1733_s27, %s2072_s27   ;;  %s1668_s26 = sphi %s1731_s26, %s2071_s26   ;;  %s1664_s25 = sphi %s1729_s25, %s2070_s25   ;;  %s1660_s24 = sphi %s1727_s24, %s2069_s24  }
   0xa   : > { %p1245_p0 = scmp.ge.s32.totalorder %s1672_s27, 1  ;;  %p45_p1 = scmp.eq.s32.totalorder %s1751_s8, 0 }
   0xb   : > { %p207_p2 = scmp.lt.s32.totalorder %s1672_s27, 3  ;;  %s1674_s10 = smov [#allocation5]  }
   0xc   : > { %s232_s11 = sshll.u32 %s1674_s10, 4  ;;  %s2062_s6 = sld [smem:[#allocation13_spill]]  ;;  %s233_s11 = int_to_ptr.vmem [resolvable:$true] %s232_s11 }
   0xd   : > { %p1756_p3 = pnand %p1245_p0, %p207_p2  ;;  %s1675_s15 = smov [#allocation7]  }
   0xe   : > { %s246_s16 = sshll.u32 %s1675_s15, 4  ;;  %s1676_s17 = smov 128   ;;  %s247_s16 = int_to_ptr.vmem [resolvable:$true] %s246_s16 }
   0xf   : > { %s230_s30 = sshll.u32 %s2060_s5, 4  ;;  %p1416_p4 = pneg %p1756_p3  ;;  %s231_s30 = int_to_ptr.hbm [resolvable:$true] %s230_s30 }
  0x10   : > { %s1677_s18 = smov 8   ;;  %s1678_s19 = smov 64  }
  0x11   : > { %p1417_p6 = pnand %p1416_p4, %p45_p1  ;;  %s1679_s20 = smov 4  }
  0x12   : > { %s244_s14 = sshll.u32 %s2062_s6, 4  ;;  %s1244_s21 = sadd.s32 4294967294, %s1672_s27   ;;  %s245_s14 = int_to_ptr.hbm [resolvable:$true] %s244_s14 }
  0x13   : > { %1419 = dma.hbm_to_vmem [thread:$0]  (!%p1417_p6), %s231_s30, 256, %s233_s11, [#allocation6], %s1676_s17, %s1676_s17, %s1677_s18  }
  0x14   : > { %1422 = dma.hbm_to_vmem [thread:$0]  (!%p1417_p6), %s245_s14, 256, %s247_s16, [#allocation6], %s1678_s19, %s1678_s19, %s1679_s20  }
  0x15   : > { %s1770_s22 = sadd.s32 1, %s1672_s27   ;;  %s31_s28 = sadd.s32 1, %s1668_s26 }
  0x16   : > { %s28_s23 = ssub.s32 %s1672_s27, %s1770_s22  ;;  %p38_p8 = scmp.ne.s32.totalorder %s1668_s26, %s1664_s25 }
  0x17   : > { %p29_p7 = scmp.eq.s32.totalorder %s28_s23, 0  ;;  %p39_p9 = scmp.eq.s32.totalorder %s1672_s27, 0 }
  0x18   : > { %p44_p10 = scmp.ne.s32.totalorder %s1664_s25, %s1660_s24  ;;  %p194_p13 = scmp.eq.s32.totalorder %s1751_s8, 1 }
  0x19   : > { %s1781_s29 = scalar_select %p29_p7, %s1668_s26, %s31_s28  }
  0x1a   : > { %p1783_p11 = por %p39_p9, %p38_p8  ;;  %p1789_p12 = por %p45_p1, %p44_p10 }
  0x1b   : > { %p200_p0 = scmp.eq.s32.totalorder %s1244_s21, 1  ;;  %p1433_p2 = scmp.lt.s32.totalorder %s1672_s27, 2 }
  0x1c   : > { %s260_s11 = sand.u32 1, %s1668_s26   ;;  %p1796_p4 = por %p194_p13, %p38_p8 }
  0x1d   : > { %p1800_p6 = por %p200_p0, %p44_p10  ;;  %s1249_s14 = sshll.u32 %s260_s11, 3 }
  0x1e   : > { %s1250_s15 = sshll.u32 %s1672_s27, 3  ;;  %s264_s19 = scalar_lea.vmem [#allocation2], %s1249_s14 }
  0x1f   : > { %s268_s18 = scalar_lea.hbm %s2050_s0, %s1250_s15  ;;  %s272_s20 = sshll.u32 %s264_s19, 4  ;;  %s273_s20 = int_to_ptr.vmem [resolvable:$true] %s272_s20 }
  0x20   : > { %s270_s23 = sshll.u32 %s268_s18, 4  ;;  %p1810_p7 = pnand %p1433_p2, %p1783_p11  ;;  %s271_s23 = int_to_ptr.hbm [resolvable:$true] %s270_s23 }
  0x21   : > { %s261_s28 = scalar_lea.sflag [#allocation3], %s260_s11  ;;  %s1572_s5 = sshra.s32 %s271_s23, 4  ;;  %s1573_s5 = int_to_ptr.hbm [resolvable:$true] %s1572_s5 }
  0x22   : > { %s1574_s6 = scalar_lea.hbm %s1573_s5, 8  ;;  %p1576_p9 = pneg %p1810_p7 }
  0x23   : > { %p1575_p8 = scmp.ne.s32.totalorder %s1573_s5, %s1574_s6  ;;  %s1579_s16 = scalar_lea.hbm %s2050_s0, 16 }
  0x24   : > { %p1580_p11 = scmp.lt.s32.totalorder %s1573_s5, %s2050_s0  ;;  %p1581_p0 = scmp.lt.s32.totalorder %s1579_s16, %s1574_s6 }
  0x25   : > { %p1577_p10 = pnand %p1576_p9, %p1575_p8 }
  0x26   : > { %p1582_p2 = por %p1581_p0, %p1580_p11 }
  0x27   : > { %p1578_p13 = pneg %p1577_p10 }
  0x29   : > { %p1583_p5 = pnand %p1582_p2, %p1578_p13 }
  0x2b   : > { %1586 = shalt.err (!%p1583_p5)
}
  0x2c   : > { %1426 = dma.hbm_to_vmem [thread:$0]  (!%p1810_p7), %s271_s23, 128, %s273_s20, %s261_s28  }
  0x2d   : > { %281 = sbr.rel (%p1756_p3) target bundleno = 5317 (0x14c5), region = 48  ;;  %s1827_s11 = sand.u32 (!%p1756_p3), 1, %s1664_s25  }
  0x2e   : > { %s1252_s18 = sshll.u32 (!%p1756_p3), %s1827_s11, 3  ;;  %s284_s19 = scalar_lea.sflag (!%p1756_p3), [#allocation3], %s1827_s11 }
  0x2f   : > { %s287_s14 = scalar_lea.vmem (!%p1756_p3), [#allocation2], %s1252_s18 }
  0x32   : > { %1647 = dma.done.wait (%p1789_p12), %s284_s19, 128  }
  0x33   : > { %1649 = vsyncadd (%p1789_p12), %s284_s19, 4294967168 }
  0x34   : > { %1651 = dma.done.wait (%p45_p1), [#allocation6], 512  }
  0x35   : > { %1653 = vsyncadd (%p45_p1), [#allocation6], 4294966784  ;;  %v1383_v0 = vld [vmem:[%s2051_s1 + $0x8] sm:$0xff]  ;;  %v1382_v1 = vld [vmem:[%s2051_s1] sm:$0xff]  ;;  %vm349_vm0 = vcmask 261120   ;;  %s1680_s10 = smov 112  }
  0x36   : > { %359 = vmatpush.bf16.msra.mxu0 %v1383_v0  ;;  %v1845_v2 = vld [vmem:[%s287_s14] sm:$0xff]  ;;  %v1850_v4 = vld [vmem:[#allocation5] sm:$0xff]  ;;  %s1681_s23 = smov 96   ;;  %s1682_s21 = smov 80   ;;  %vm370_vm1 = vcmask 130048   ;;  %vm408_vm2 = vcmask 1043456  }
  0x37   : > { %v331_v3 = vpack.c.bf16 %v1845_v2, %v1845_v2  ;;  %v336_v5 = vperm.slane %v1850_v4, 0  ;;  %s1683_s28 = smov 64   ;;  %s1684_s15 = smov 48   ;;  %vm390_vm3 = vcmask 64512   ;;  %v1385_v43 = vld [vmem:[%s2052_s2 + $0x8] sm:$0xff]  ;;  %v1384_v48 = vld [vmem:[%s2052_s2] sm:$0xff] }
  0x38   : > { %s1685_s30 = smov 16   ;;  %v491_v52 = vperm.slane %v1850_v4, 1  ;;  %v1686_v58 = vmov 32.0   ;;  %vm631_vm8 = vcmask 523264   ;;  %s1147_s19 = scalar_lea.sflag [#allocation4], %s1827_s11 }
  0x39   : > { %s1622_s9 = scalar_lea.hbm %s2057_s7, 2 }
  0x3a   : > { %360 = vmatpush.bf16.msra.mxu0 %v1382_v1 }
  0x3d   : > { %1263 = vmatmul.msk.bf16.vlgmr.msra.gmra.mxu0 %vm349_vm0, %v331_v3 }
  0x3e   : > { %513 = vmatpush.bf16.msrb.mxu0 %v1385_v43  ;;  %v606_v43 = vperm.slane %v1850_v4, 5 }
  0x42   : > { %514 = vmatpush.bf16.msrb.mxu0 %v1384_v48 }
  0xba   : > { %v362_v6 = vpop.f32.mrf.mxu0 }
  0xbb   : > { %v363_v7 = vadd.f32 %v362_v6, %v336_v5 }
  0xbd   : > { %v366_v8 = vpack.c.bf16 %v363_v7, %v363_v7  ;;  %v1387_v7 = vld [vmem:[%s2053_s3 + $0x8] sm:$0xff] }
  0xbf   : > { %425 = vrot.lane.b32.xlu1 %v366_v8, %s1680_s10  ;;  %368 = vrot.lane.b32.xlu0 %v366_v8, %s1681_s23 }
  0xc2   : > { %v364_v9 = vpop.f32.mrf.mxu0 }
  0xc7   : > { %427 = vrot.lane.b32.xlu0 %v366_v8, %s1682_s21 }
  0xcf   : > { %403 = vrot.lane.b32.xlu0 %v366_v8, %s1683_s28 }
  0xd7   : > { %460 = vrot.lane.b32.xlu0 %v366_v8, %s1684_s15 }
 0x131   : > { %v369_v10 = vpop.permute.xlu0 %368  ;;  %v426_v14 = vpop.permute.xlu1 %425 }
 0x132   : > { %v375_v11 = vsel %vm370_vm1, %v369_v10, 0 }
 0x133   : > { %384 = vmatpush.bf16.xpose.msra.mxu1 %v375_v11 }
 0x139   : > { %v428_v12 = vpop.permute.xlu0 %427 }
 0x13a   : > { %1264 = vmatmul.msk.bf16.vlgmr.msra.gmra.mxu1 %vm370_vm1, %v366_v8  ;;  %v433_v13 = vsel %vm370_vm1, %v428_v12, 0  ;;  %v1386_v8 = vld [vmem:[%s2053_s3] sm:$0xff] }
 0x13b   : > { %442 = vmatpush.bf16.xpose.msra.mxu3 %v433_v13  ;;  %581 = vmatpush.bf16.msrb.mxu1 %v1387_v7 }
 0x13f   : > { %582 = vmatpush.bf16.msrb.mxu1 %v1386_v8 }
 0x141   : > { %v404_v15 = vpop.permute.xlu0 %403 }
 0x142   : > { %1266 = vmatmul.msk.bf16.vlgmr.msra.gmra.mxu3 %vm370_vm1, %v426_v14  ;;  %v410_v16 = vsel %vm408_vm2, %v404_v15, 0 }
 0x143   : > { %419 = vmatpush.bf16.msra.mxu2 %v410_v16 }
 0x149   : > { %v461_v17 = vpop.permute.xlu0 %460 }
 0x14a   : > { %v466_v18 = vsel %vm408_vm2, %v461_v17, 0 }
 0x14b   : > { %475 = vmatpush.bf16.msrb.mxu2 %v466_v18  ;;  %v550_v18 = vperm.slane %v1850_v4, 2 }
 0x1b7   : > { %v386_v19 = vpop.f32.mrf.mxu1 }
 0x1b8   : > { %v391_v20 = vsel %vm390_vm3, %v386_v19, -inf }
 0x1b9   : > { %392 = vmax.xlane.f32.xlu1 %v391_v20 }
 0x1bf   : > { %v388_v21 = vpop.f32.mrf.mxu1 }
 0x1c0   : > { %v552_v21 = vperm.slane %v1850_v4, 3 }
 0x1c5   : > { %v444_v22 = vpop.f32.mrf.mxu3 }
 0x1c6   : > { %v448_v23 = vsel %vm390_vm3, %v444_v22, -inf }
 0x1c7   : > { %449 = vmax.xlane.f32.xlu2 %v448_v23 }
 0x1cd   : > { %v446_v24 = vpop.f32.mrf.mxu3 }
 0x22c   : > { %v393_v25 = vpop.xlane.xlu1 %392 }
 0x22d   : > { %v394_v26 = vsub.f32 %v386_v19, %v393_v25  ;;  %v1391_v25 = vld [vmem:[%s2054_s4 + $0x18] sm:$0xff] }
 0x22e   : > { %639 = vmatpush.bf16.msrb.mxu3 %v1391_v25 }
 0x22f   : > { %v395_v27 = vmul.f32 1.442695, %v394_v26  ;;  %v1390_v26 = vld [vmem:[%s2054_s4 + $0x10] sm:$0xff] }
 0x231   : > { %1482 = vpow2.f32 %v395_v27  ;;  %v1389_v27 = vld [vmem:[%s2054_s4 + $0x8] sm:$0xff] }
 0x232   : > { %640 = vmatpush.bf16.msrb.mxu3 %v1390_v26 }
 0x236   : > { %641 = vmatpush.bf16.msrb.mxu3 %v1389_v27 }
 0x237   : > { %v1483_v28 = vpop.eup %1482 }
 0x238   : > { %v397_v29 = vsel %vm390_vm3, %v1483_v28, 0.0 }
 0x239   : > { %398 = vadd.xlane.f32.xlu2 %v397_v29  ;;  %v559_v29 = vperm.slane %v1850_v4, 4 }
 0x23a   : > { %v450_v30 = vpop.xlane.xlu2 %449 }
 0x23b   : > { %v451_v31 = vsub.f32 %v444_v22, %v450_v30 }
 0x23d   : > { %v452_v32 = vmul.f32 1.442695, %v451_v31 }
 0x23f   : > { %1484 = vpow2.f32 %v452_v32 }
 0x245   : > { %v1485_v33 = vpop.eup %1484 }
 0x246   : > { %v454_v34 = vsel %vm390_vm3, %v1485_v33, 0.0 }
 0x247   : > { %455 = vadd.xlane.f32.xlu2 %v454_v34 }
 0x2ac   : > { %v399_v35 = vpop.xlane.xlu2 %398 }
 0x2ad   : > { %1486 = vrcp.f32 %v399_v35 }
 0x2b3   : > { %v1487_v36 = vpop.eup %1486 }
 0x2b4   : > { %v401_v37 = vmul.f32 %v1487_v36, %v1483_v28  ;;  %v1388_v28 = vld [vmem:[%s2054_s4] sm:$0xff] }
 0x2b5   : > { %642 = vmatpush.bf16.msrb.mxu3 %v1388_v28 }
 0x2b6   : > { %v402_v38 = vpack.c.bf16 %v401_v37, %v401_v37 }
 0x2b8   : > { %1265 = vmatmul.msk.bf16.vlgmr.msra.gmra.mxu2 %vm390_vm3, %v402_v38 }
 0x2ba   : > { %v456_v39 = vpop.xlane.xlu2 %455 }
 0x2bb   : > { %1488 = vrcp.f32 %v456_v39 }
 0x2bc   : > { %1490 = vrcp.f32 %v1686_v58 }
 0x2c1   : > { %v1489_v40 = vpop.eup %1488 }
 0x2c2   : > { %v458_v41 = vmul.f32 %v1489_v40, %v1485_v33  ;;  %v1491_v59 = vpop.eup %1490 }
 0x2c3   : > { %v525_v60 = vmul.f32 32.0, %v1491_v59  ;;  %vm529_vm4 = vweird.f32 %v1491_v59 }
 0x2c4   : > { %v459_v42 = vpack.c.bf16 %v458_v41, %v458_v41 }
 0x2c5   : > { %v526_v61 = vsub.f32 1.0, %v525_v60 }
 0x2c7   : > { %v527_v62 = vmul.f32 %v1491_v59, %v526_v61 }
 0x2c8   : > { %1267 = vmatmul.msk.bf16.vlgmr.msrb.gmra.mxu2 %vm390_vm3, %v459_v42 }
 0x2c9   : > { %v528_v63 = vadd.f32 %v1491_v59, %v527_v62 }
 0x2cb   : > { %v1882_v0 = vsel %vm529_vm4, %v1491_v59, %v528_v63  ;;  %vm1050_vm4 = vcmask 1040384  }
 0x33b   : > { %v421_v44 = vpop.f32.mrf.mxu2 }
 0x343   : > { %v423_v45 = vpop.f32.mrf.mxu2 }
 0x34b   : > { %v477_v46 = vpop.f32.mrf.mxu2 }
 0x34c   : > { %482 = vrot.lane.b32.xlu2 %v477_v46, %s1685_s30 }
 0x353   : > { %v479_v47 = vpop.f32.mrf.mxu2 }
 0x3a6   : > { %v483_v49 = vpop.permute.xlu2 %482 }
 0x3a7   : > { %v485_v50 = vsel %vm370_vm1, %v421_v44, %v483_v49 }
 0x3a8   : > { %v486_v51 = vpack.c.bf16 %v485_v50, %v485_v50 }
 0x3aa   : > { %1276 = vmatmul.msk.bf16.vlgmr.msrb.gmra.mxu0 %vm349_vm0, %v486_v51 }
 0x427   : > { %v516_v53 = vpop.f32.mrf.mxu0 }
 0x428   : > { %v517_v54 = vadd.f32 %v516_v53, %v491_v52 }
 0x42a   : > { %v520_v55 = vadd.f32 %v517_v54, %v1845_v2  ;;  %v1393_v54 = vld [vmem:[%s2051_s1 + $0x18] sm:$0xff] }
 0x42b   : > { %705 = vmatpush.bf16.msra.mxu2 %v1393_v54 }
 0x42c   : > { %v521_v56 = vsel %vm349_vm0, %v520_v55, 0.0 }
 0x42d   : > { %522 = vadd.xlane.f32.xlu0 %v521_v56 }
 0x42f   : > { %v518_v57 = vpop.f32.mrf.mxu0 }
 0x4a0   : > { %v523_v1 = vpop.xlane.xlu0 %522 }
 0x4a1   : > { %v531_v3 = vmul.f32 %v1882_v0, %v523_v1 }
 0x4a3   : > { %v532_v5 = vsub.f32 %v520_v55, %v531_v3  ;;  %v1392_v55 = vld [vmem:[%s2051_s1 + $0x10] sm:$0xff]  ;;  %v671_v3 = vperm.slane %v1850_v4, 6 }
 0x4a4   : > { %706 = vmatpush.bf16.msra.mxu2 %v1392_v55 }
 0x4a5   : > { %v533_v6 = vmul.f32 %v532_v5, %v532_v5 }
 0x4a7   : > { %v534_v2 = vsel %vm349_vm0, %v533_v6, 0.0  ;;  %v673_v6 = vperm.slane %v1850_v4, 7 }
 0x4a8   : > { %535 = vadd.xlane.f32.xlu2 %v534_v2 }
 0x51b   : > { %v536_v9 = vpop.xlane.xlu2 %535 }
 0x51c   : > { %v537_v10 = vmul.f32 %v536_v9, %v1882_v0 }
 0x51e   : > { %v538_v11 = vadd.f32 1e-12, %v537_v10  ;;  %v1928_v10 = vld [vmem:[#allocation5 + $0x8] sm:$0xff] }
 0x520   : > { %1492 = vrsqrt.f32 %v538_v11  ;;  %vm545_vm6 = vweird.f32 %v538_v11 }
 0x526   : > { %v1493_v12 = vpop.eup %1492 }
 0x527   : > { %v540_v13 = vmul.f32 %v1493_v12, %v538_v11  ;;  %vm546_vm5 = vweird.f32 %v1493_v12  ;;  %v683_v11 = vperm.slane %v1928_v10, 0 }
 0x528   : > { %vm547_vm7 = vmor %vm545_vm6, %vm546_vm5 }
 0x529   : > { %v541_v14 = vmul.f32 %v1493_v12, %v540_v13 }
 0x52b   : > { %v542_v15 = vmul.f32 0.5, %v541_v14 }
 0x52d   : > { %v543_v16 = vsub.f32 1.5, %v542_v15 }
 0x52f   : > { %v544_v17 = vmul.f32 %v1493_v12, %v543_v16 }
 0x531   : > { %v548_v19 = vsel %vm547_vm7, %v1493_v12, %v544_v17 }
 0x532   : > { %v549_v20 = vmul.f32 %v548_v19, %v532_v5 }
 0x534   : > { %v551_v22 = vmul.f32 %v550_v18, %v549_v20 }
 0x536   : > { %v553_v23 = vadd.f32 %v552_v21, %v551_v22 }
 0x538   : > { %v554_v24 = vpack.c.bf16 %v553_v23, %v553_v23 }
 0x53a   : > { %1285 = vmatmul.msk.bf16.vlgmr.msrb.gmra.mxu1 %vm349_vm0, %v554_v24 }
 0x5b7   : > { %v584_v30 = vpop.f32.mrf.mxu1 }
 0x5b8   : > { %v585_v31 = vadd.f32 %v584_v30, %v559_v29 }
 0x5ba   : > { %v589_v32 = vmul.f32 0.044715, %v585_v31  ;;  %v588_v39 = vmul.f32 0.5, %v585_v31 }
 0x5bc   : > { %v590_v33 = vmul.f32 %v589_v32, %v585_v31 }
 0x5be   : > { %v591_v34 = vmul.f32 %v590_v33, %v585_v31 }
 0x5bf   : > { %v586_v35 = vpop.f32.mrf.mxu1 }
 0x5c0   : > { %v592_v36 = vadd.f32 %v591_v34, %v585_v31 }
 0x5c2   : > { %v593_v37 = vmul.f32 0.7978846, %v592_v36 }
 0x5c4   : > { %1494 = vtanh.f32 %v593_v37 }
 0x5ca   : > { %v1495_v38 = vpop.eup %1494 }
 0x5cb   : > { %v595_v40 = vadd.f32 1.0, %v1495_v38 }
 0x5cd   : > { %v596_v41 = vmul.f32 %v595_v40, %v588_v39 }
 0x5cf   : > { %v597_v42 = vpack.c.bf16 %v596_v41, %v596_v41 }
 0x5d1   : > { %1302 = vmatmul.msk.bf16.vlgmr.msrb.gmra.mxu3 %vm631_vm8, %v597_v42 }
 0x654   : > { %v644_v44 = vpop.f32.mrf.mxu3 }
 0x655   : > { %v645_v45 = vadd.f32 %v644_v44, %v606_v43 }
 0x657   : > { %v648_v46 = vadd.f32 %v645_v45, %v553_v23 }
 0x659   : > { %v649_v47 = vsel %vm349_vm0, %v648_v46, 0.0 }
 0x65a   : > { %650 = vadd.xlane.f32.xlu1 %v649_v47 }
 0x65c   : > { %v646_v48 = vpop.f32.mrf.mxu3 }
 0x6cd   : > { %v651_v49 = vpop.xlane.xlu1 %650 }
 0x6ce   : > { %v652_v50 = vmul.f32 %v651_v49, %v1882_v0  ;;  %v1395_v49 = vld [vmem:[%s2052_s2 + $0x18] sm:$0xff] }
 0x6d0   : > { %v653_v51 = vsub.f32 %v648_v46, %v652_v50 }
 0x6d2   : > { %v654_v52 = vmul.f32 %v653_v51, %v653_v51 }
 0x6d4   : > { %v655_v53 = vsel %vm349_vm0, %v654_v52, 0.0 }
 0x6d5   : > { %656 = vadd.xlane.f32.xlu1 %v655_v53  ;;  %v1394_v53 = vld [vmem:[%s2052_s2 + $0x10] sm:$0xff] }
 0x748   : > { %v657_v56 = vpop.xlane.xlu1 %656 }
 0x749   : > { %v658_v57 = vmul.f32 %v657_v56, %v1882_v0 }
 0x74b   : > { %v659_v58 = vadd.f32 1e-12, %v658_v57  ;;  %v835_v57 = vperm.slane %v1928_v10, 1 }
 0x74d   : > { %1496 = vrsqrt.f32 %v659_v58  ;;  %vm666_vm10 = vweird.f32 %v659_v58 }
 0x753   : > { %v1497_v59 = vpop.eup %1496 }
 0x754   : > { %v661_v60 = vmul.f32 %v1497_v59, %v659_v58  ;;  %vm667_vm9 = vweird.f32 %v1497_v59 }
 0x755   : > { %vm668_vm11 = vmor %vm666_vm10, %vm667_vm9 }
 0x756   : > { %v662_v61 = vmul.f32 %v1497_v59, %v661_v60 }
 0x758   : > { %v663_v62 = vmul.f32 0.5, %v662_v61 }
 0x75a   : > { %v664_v63 = vsub.f32 1.5, %v663_v62 }
 0x75c   : > { %v665_v1 = vmul.f32 %v1497_v59, %v664_v63 }
 0x75e   : > { %v669_v5 = vsel %vm668_vm11, %v1497_v59, %v665_v1 }
 0x75f   : > { %v670_v2 = vmul.f32 %v669_v5, %v653_v51 }
 0x761   : > { %v672_v7 = vmul.f32 %v671_v3, %v670_v2  ;;  %v1397_v2 = vld [vmem:[%s2053_s3 + $0x18] sm:$0xff] }
 0x763   : > { %v1923_v8 = vadd.f32 %v673_v6, %v672_v7  ;;  %v1396_v7 = vld [vmem:[%s2053_s3 + $0x10] sm:$0xff] }
 0x765   : > { %v677_v9 = vpack.c.bf16 %v1923_v8, %v1923_v8 }
 0x767   : > { %1315 = vmatmul.msk.bf16.vlgmr.msra.gmra.mxu2 %vm349_vm0, %v677_v9 }
 0x7ea   : > { %v708_v12 = vpop.f32.mrf.mxu2 }
 0x7eb   : > { %v709_v13 = vadd.f32 %v708_v12, %v683_v11 }
 0x7ed   : > { %v712_v14 = vpack.c.bf16 %v709_v13, %v709_v13 }
 0x7ef   : > { %714 = vrot.lane.b32.xlu2 %v712_v14, %s1681_s23  ;;  %768 = vrot.lane.b32.xlu0 %v712_v14, %s1680_s10 }
 0x7f0   : > { %770 = vrot.lane.b32.xlu1 %v712_v14, %s1682_s21 }
 0x7f2   : > { %v710_v4 = vpop.f32.mrf.mxu2 }
 0x849   : > { %v715_v15 = vpop.permute.xlu2 %714 }
 0x84a   : > { %v720_v16 = vsel %vm370_vm1, %v715_v15, 0 }
 0x84b   : > { %729 = vmatpush.bf16.xpose.msra.mxu0 %v720_v16 }
 0x852   : > { %1316 = vmatmul.msk.bf16.vlgmr.msra.gmra.mxu0 %vm370_vm1, %v712_v14 }
 0x853   : > { %857 = vmatpush.bf16.msrb.mxu0 %v1395_v49 }
 0x857   : > { %858 = vmatpush.bf16.msrb.mxu0 %v1394_v53  ;;  %v1403_v53 = vld [vmem:[#allocation7 + $0x8] sm:$0xff] }
 0x861   : > { %v769_v19 = vpop.permute.xlu0 %768 }
 0x862   : > { %v771_v17 = vpop.permute.xlu1 %770 }
 0x863   : > { %v776_v18 = vsel %vm370_vm1, %v771_v17, 0  ;;  %v887_v17 = vperm.slane %v1928_v10, 2 }
 0x864   : > { %785 = vmatpush.bf16.xpose.msra.mxu3 %v776_v18 }
 0x86b   : > { %1318 = vmatmul.msk.bf16.vlgmr.msra.gmra.mxu3 %vm370_vm1, %v769_v19  ;;  %v889_v19 = vperm.slane %v1928_v10, 3 }
 0x8cf   : > { %v731_v20 = vpop.f32.mrf.mxu0 }
 0x8d0   : > { %v735_v21 = vsel %vm390_vm3, %v731_v20, -inf }
 0x8d1   : > { %736 = vmax.xlane.f32.xlu0 %v735_v21 }
 0x8d7   : > { %v733_v22 = vpop.f32.mrf.mxu0 }
 0x8ee   : > { %v787_v23 = vpop.f32.mrf.mxu3 }
 0x8ef   : > { %v791_v24 = vsel %vm390_vm3, %v787_v23, -inf }
 0x8f0   : > { %792 = vmax.xlane.f32.xlu1 %v791_v24  ;;  %v1401_v24 = vld [vmem:[%s2054_s4 + $0x38] sm:$0xff] }
 0x8f1   : > { %977 = vmatpush.bf16.msrb.mxu3 %v1401_v24 }
 0x8f6   : > { %v789_v25 = vpop.f32.mrf.mxu3 }
 0x8f7   : > { %v1400_v25 = vld [vmem:[%s2054_s4 + $0x30] sm:$0xff] }
 0x8f8   : > { %978 = vmatpush.bf16.msrb.mxu3 %v1400_v25 }
 0x909   : > { %803 = vrot.lane.b32.xlu1 %v712_v14, %s1684_s15  ;;  %s327_s15 = scalar_lea.vmem [#allocation8], %s1827_s11 }
 0x944   : > { %v737_v26 = vpop.xlane.xlu0 %736 }
 0x945   : > { %v738_v27 = vsub.f32 %v731_v20, %v737_v26  ;;  %v1399_v26 = vld [vmem:[%s2054_s4 + $0x28] sm:$0xff] }
 0x946   : > { %979 = vmatpush.bf16.msrb.mxu3 %v1399_v26 }
 0x947   : > { %v739_v28 = vmul.f32 1.442695, %v738_v27  ;;  %v1398_v27 = vld [vmem:[%s2054_s4 + $0x20] sm:$0xff] }
 0x949   : > { %1498 = vpow2.f32 %v739_v28  ;;  %v897_v28 = vperm.slane %v1928_v10, 4 }
 0x94a   : > { %980 = vmatpush.bf16.msrb.mxu3 %v1398_v27 }
 0x94f   : > { %v1499_v29 = vpop.eup %1498 }
 0x950   : > { %v741_v30 = vsel %vm390_vm3, %v1499_v29, 0.0 }
 0x951   : > { %742 = vadd.xlane.f32.xlu0 %v741_v30 }
 0x963   : > { %v793_v31 = vpop.xlane.xlu1 %792 }
 0x964   : > { %v794_v32 = vsub.f32 %v787_v23, %v793_v31 }
 0x965   : > { %747 = vrot.lane.b32.xlu0 %v712_v14, %s1683_s28  ;;  %s1155_s28 = scalar_lea.hbm %s2057_s7, %s1751_s8 }
 0x966   : > { %v795_v33 = vmul.f32 1.442695, %v794_v32  ;;  %s1159_s18 = sshll.u32 %s1155_s28, 4  ;;  %s1160_s18 = int_to_ptr.hbm [resolvable:$true] %s1159_s18 }
 0x967   : > { %s1616_s14 = sshra.s32 %s1160_s18, 4  ;;  %s1617_s14 = int_to_ptr.hbm [resolvable:$true] %s1616_s14 }
 0x968   : > { %1500 = vpow2.f32 %v795_v33  ;;  %s1618_s5 = scalar_lea.hbm %s1617_s14, 1  ;;  %p1623_p12 = scmp.lt.s32.totalorder %s1617_s14, %s2057_s7 }
 0x969   : > { %p1619_p1 = scmp.ne.s32.totalorder %s1617_s14, %s1618_s5  ;;  %p1624_p7 = scmp.lt.s32.totalorder %s1622_s9, %s1618_s5 }
 0x96b   : > { %p1620_p3 = pnand %p1619_p1, %p1796_p4  ;;  %p1625_p8 = por %p1624_p7, %p1623_p12 }
 0x96d   : > { %p1621_p5 = pneg %p1620_p3 }
 0x96e   : > { %v1501_v34 = vpop.eup %1500 }
 0x96f   : > { %v797_v35 = vsel %vm390_vm3, %v1501_v34, 0.0  ;;  %p1626_p9 = pnand %p1625_p8, %p1621_p5 }
 0x970   : > { %798 = vadd.xlane.f32.xlu2 %v797_v35 }
 0x97b   : > { %v804_v36 = vpop.permute.xlu1 %803 }
 0x97c   : > { %v809_v37 = vsel %vm408_vm2, %v804_v36, 0 }
 0x97d   : > { %818 = vmatpush.bf16.msrb.mxu2 %v809_v37 }
 0x981   : > { %1039 = vmatpush.bf16.msra.mxu2 %v1403_v53 }
 0x9c4   : > { %v743_v38 = vpop.xlane.xlu0 %742 }
 0x9c5   : > { %1502 = vrcp.f32 %v743_v38 }
 0x9cb   : > { %v1503_v39 = vpop.eup %1502 }
 0x9cc   : > { %v745_v40 = vmul.f32 %v1503_v39, %v1499_v29 }
 0x9ce   : > { %v746_v43 = vpack.c.bf16 %v745_v40, %v745_v40 }
 0x9d7   : > { %v748_v41 = vpop.permute.xlu0 %747 }
 0x9d8   : > { %v753_v42 = vsel %vm408_vm2, %v748_v41, 0 }
 0x9d9   : > { %762 = vmatpush.bf16.msra.mxu1 %v753_v42  ;;  %v945_v42 = vperm.slane %v1928_v10, 5 }
 0x9dc   : > { %1317 = vmatmul.msk.bf16.vlgmr.msra.gmra.mxu1 %vm390_vm3, %v746_v43 }
 0x9dd   : > { %919 = vmatpush.bf16.msrb.mxu1 %v1397_v2 }
 0x9e1   : > { %920 = vmatpush.bf16.msrb.mxu1 %v1396_v7 }
 0x9e3   : > { %v799_v44 = vpop.xlane.xlu2 %798 }
 0x9e4   : > { %1504 = vrcp.f32 %v799_v44 }
 0x9ea   : > { %v1505_v45 = vpop.eup %1504 }
 0x9eb   : > { %v801_v46 = vmul.f32 %v1505_v45, %v1501_v34 }
 0x9ed   : > { %v802_v47 = vpack.c.bf16 %v801_v46, %v801_v46 }
 0x9ef   : > { %1319 = vmatmul.msk.bf16.vlgmr.msrb.gmra.mxu2 %vm390_vm3, %v802_v47 }
 0xa59   : > { %v764_v48 = vpop.f32.mrf.mxu1 }
 0xa61   : > { %v766_v50 = vpop.f32.mrf.mxu1 }
 0xa72   : > { %v820_v51 = vpop.f32.mrf.mxu2 }
 0xa73   : > { %825 = vrot.lane.b32.xlu2 %v820_v51, %s1685_s30  ;;  %s1157_s30 = sshll.u32 %s327_s15, 4  ;;  %s1158_s30 = int_to_ptr.vmem [resolvable:$true] %s1157_s30 }
 0xa7a   : > { %v822_v52 = vpop.f32.mrf.mxu2 }
 0xacd   : > { %v826_v54 = vpop.permute.xlu2 %825 }
 0xace   : > { %v828_v55 = vsel %vm370_vm1, %v764_v48, %v826_v54  ;;  %v1402_v54 = vld [vmem:[#allocation7] sm:$0xff] }
 0xacf   : > { %v829_v56 = vpack.c.bf16 %v828_v55, %v828_v55  ;;  %1040 = vmatpush.bf16.msra.mxu2 %v1402_v54 }
 0xad1   : > { %1332 = vmatmul.msk.bf16.vlgmr.msrb.gmra.mxu0 %vm349_vm0, %v829_v56 }
 0xb4e   : > { %v860_v58 = vpop.f32.mrf.mxu0 }
 0xb4f   : > { %v861_v59 = vadd.f32 %v860_v58, %v835_v57 }
 0xb51   : > { %v864_v60 = vadd.f32 %v861_v59, %v1923_v8 }
 0xb53   : > { %v865_v61 = vsel %vm349_vm0, %v864_v60, 0.0 }
 0xb54   : > { %866 = vadd.xlane.f32.xlu1 %v865_v61 }
 0xb56   : > { %v862_v62 = vpop.f32.mrf.mxu0 }
 0xbc7   : > { %v867_v63 = vpop.xlane.xlu1 %866 }
 0xbc8   : > { %v868_v1 = vmul.f32 %v867_v63, %v1882_v0 }
 0xbca   : > { %v869_v3 = vsub.f32 %v864_v60, %v868_v1  ;;  %v1009_v1 = vperm.slane %v1928_v10, 6 }
 0xbcc   : > { %v870_v5 = vmul.f32 %v869_v3, %v869_v3 }
 0xbce   : > { %v871_v6 = vsel %vm349_vm0, %v870_v5, 0.0 }
 0xbcf   : > { %872 = vadd.xlane.f32.xlu0 %v871_v6  ;;  %v1011_v6 = vperm.slane %v1928_v10, 7 }
 0xc42   : > { %v873_v8 = vpop.xlane.xlu0 %872 }
 0xc43   : > { %v874_v9 = vmul.f32 %v873_v8, %v1882_v0  ;;  %v1046_v8 = vlaneseq }
 0xc45   : > { %v875_v11 = vadd.f32 1e-12, %v874_v9  ;;  %v1994_v9 = vand.u32 127, %v1046_v8 }
 0xc47   : > { %1506 = vrsqrt.f32 %v875_v11  ;;  %vm882_vm13 = vweird.f32 %v875_v11  ;;  %vm1048_vm3 = vcmp.lt.s32.totalorder %v1994_v9, 64  ;;  %vm1071_vm9 = vcmp.eq.s32.totalorder %v1994_v9, 0 }
 0xc48   : > { %vm1095_vm10 = vcmp.eq.s32.totalorder %v1994_v9, 1 }
 0xc4d   : > { %v1507_v12 = vpop.eup %1506 }
 0xc4e   : > { %v877_v13 = vmul.f32 %v1507_v12, %v875_v11  ;;  %vm883_vm12 = vweird.f32 %v1507_v12 }
 0xc4f   : > { %vm884_vm14 = vmor %vm882_vm13, %vm883_vm12 }
 0xc50   : > { %v878_v14 = vmul.f32 %v1507_v12, %v877_v13 }
 0xc52   : > { %v879_v4 = vmul.f32 0.5, %v878_v14 }
 0xc54   : > { %v880_v15 = vsub.f32 1.5, %v879_v4 }
 0xc56   : > { %v881_v16 = vmul.f32 %v1507_v12, %v880_v15 }
 0xc58   : > { %v885_v18 = vsel %vm884_vm14, %v1507_v12, %v881_v16  ;;  %vm1119_vm14 = vcmp.eq.s32.totalorder %v1994_v9, 2 }
 0xc59   : > { %v886_v20 = vmul.f32 %v885_v18, %v869_v3 }
 0xc5b   : > { %v888_v21 = vmul.f32 %v887_v17, %v886_v20 }
 0xc5d   : > { %v890_v22 = vadd.f32 %v889_v19, %v888_v21 }
 0xc5f   : > { %v891_v23 = vpack.c.bf16 %v890_v22, %v890_v22 }
 0xc61   : > { %1345 = vmatmul.msk.bf16.vlgmr.msrb.gmra.mxu1 %vm349_vm0, %v891_v23 }
 0xcde   : > { %v922_v29 = vpop.f32.mrf.mxu1 }
 0xcdf   : > { %v923_v30 = vadd.f32 %v922_v29, %v897_v28 }
 0xce1   : > { %v927_v31 = vmul.f32 0.044715, %v923_v30  ;;  %v926_v38 = vmul.f32 0.5, %v923_v30 }
 0xce3   : > { %v928_v32 = vmul.f32 %v927_v31, %v923_v30 }
 0xce5   : > { %v929_v33 = vmul.f32 %v928_v32, %v923_v30 }
 0xce6   : > { %v924_v34 = vpop.f32.mrf.mxu1 }
 0xce7   : > { %v930_v35 = vadd.f32 %v929_v33, %v923_v30 }
 0xce9   : > { %v931_v36 = vmul.f32 0.7978846, %v930_v35 }
 0xceb   : > { %1508 = vtanh.f32 %v931_v36 }
 0xcf1   : > { %v1509_v37 = vpop.eup %1508 }
 0xcf2   : > { %v933_v39 = vadd.f32 1.0, %v1509_v37 }
 0xcf4   : > { %v934_v40 = vmul.f32 %v933_v39, %v926_v38 }
 0xcf6   : > { %v935_v41 = vpack.c.bf16 %v934_v40, %v934_v40 }
 0xcf8   : > { %1370 = vmatmul.msk.bf16.vlgmr.msrb.gmra.mxu3 %vm631_vm8, %v935_v41 }
 0xd7b   : > { %v982_v43 = vpop.f32.mrf.mxu3 }
 0xd7c   : > { %v983_v44 = vadd.f32 %v982_v43, %v945_v42 }
 0xd7e   : > { %v986_v45 = vadd.f32 %v983_v44, %v890_v22 }
 0xd80   : > { %v987_v46 = vsel %vm349_vm0, %v986_v45, 0.0 }
 0xd81   : > { %988 = vadd.xlane.f32.xlu2 %v987_v46 }
 0xd83   : > { %v984_v47 = vpop.f32.mrf.mxu3 }
 0xdf4   : > { %v989_v48 = vpop.xlane.xlu2 %988 }
 0xdf5   : > { %v990_v49 = vmul.f32 %v989_v48, %v1882_v0 }
 0xdf7   : > { %v991_v50 = vsub.f32 %v986_v45, %v990_v49 }
 0xdf9   : > { %v992_v51 = vmul.f32 %v991_v50, %v991_v50 }
 0xdfb   : > { %v993_v52 = vsel %vm349_vm0, %v992_v51, 0.0 }
 0xdfc   : > { %994 = vadd.xlane.f32.xlu1 %v993_v52 }
 0xe6f   : > { %v995_v55 = vpop.xlane.xlu1 %994 }
 0xe70   : > { %v996_v56 = vmul.f32 %v995_v55, %v1882_v0 }
 0xe72   : > { %v997_v57 = vadd.f32 1e-12, %v996_v56 }
 0xe74   : > { %1510 = vrsqrt.f32 %v997_v57  ;;  %vm1004_vm1 = vweird.f32 %v997_v57 }
 0xe7a   : > { %v1511_v58 = vpop.eup %1510 }
 0xe7b   : > { %v999_v59 = vmul.f32 %v1511_v58, %v997_v57  ;;  %vm1005_vm15 = vweird.f32 %v1511_v58 }
 0xe7c   : > { %vm1006_vm2 = vmor %vm1004_vm1, %vm1005_vm15 }
 0xe7d   : > { %v1000_v60 = vmul.f32 %v1511_v58, %v999_v59 }
 0xe7f   : > { %v1001_v61 = vmul.f32 0.5, %v1000_v60 }
 0xe81   : > { %v1002_v62 = vsub.f32 1.5, %v1001_v61 }
 0xe83   : > { %v1003_v63 = vmul.f32 %v1511_v58, %v1002_v62 }
 0xe85   : > { %v1007_v3 = vsel %vm1006_vm2, %v1511_v58, %v1003_v63 }
 0xe86   : > { %v1008_v5 = vmul.f32 %v1007_v3, %v991_v50 }
 0xe88   : > { %v1010_v2 = vmul.f32 %v1009_v1, %v1008_v5 }
 0xe8a   : > { %v1012_v7 = vadd.f32 %v1011_v6, %v1010_v2 }
 0xe8c   : > { %v1013_v0 = vpack.c.bf16 %v1012_v7, %v1012_v7 }
 0xe8e   : > { %1379 = vmatmul.msk.bf16.vlgmr.msra.gmra.mxu2 %vm349_vm0, %v1013_v0 }
 0xf11   : > { %v1042_v11 = vpop.f32.mrf.mxu2 }
 0xf12   : > { %v1049_v12 = vsel %vm1048_vm3, %v1042_v11, -1e+30  ;;  %vm1143_vm3 = vcmp.eq.s32.totalorder %v1994_v9, 3 }
 0xf13   : > { %v1051_v13 = vsel %vm1050_vm4, %v1049_v12, -inf }
 0xf14   : > { %1052 = vmax.xlane.f32.xlu0 %v1051_v13 }
 0xf19   : > { %v1044_v14 = vpop.f32.mrf.mxu2 }
 0xf87   : > { %v1053_v4 = vpop.xlane.xlu0 %1052 }
 0xf88   : > { %vm1054_vm5 = vcmp.ge.f32.partialorder %v1049_v12, %v1053_v4 }
 0xf89   : > { %v1055_v10 = vsel %vm1054_vm5, %v1994_v9, 128 }
 0xf8a   : > { %v1056_v15 = vsel %vm1050_vm4, %v1055_v10, 2147483647 }
 0xf8b   : > { %v1058_v16 = vshra.s32 %v1056_v15, 16  ;;  %v1057_v18 = vand.u32 65535, %v1056_v15 }
 0xf8d   : > { %v1060_v17 = vcvt.s32.f32 %v1058_v16  ;;  %v1059_v20 = vcvt.s32.f32 %v1057_v18 }
 0xf8f   : > { %1061 = vmin.xlane.f32.xlu1 %v1060_v17 }
0x1002   : > { %v1062_v19 = vpop.xlane.xlu1 %1061 }
0x1003   : > { %vm1063_vm0 = vcmp.eq.f32.partialorder %v1060_v17, %v1062_v19  ;;  %v1068_v22 = vcvt.f32.s32 %v1062_v19 }
0x1004   : > { %v1064_v21 = vsel %vm1063_vm0, %v1059_v20, inf }
0x1005   : > { %1065 = vmin.xlane.f32.xlu0 %v1064_v21  ;;  %v1069_v24 = vshll.u32 %v1068_v22, 16 }
0x1078   : > { %v1066_v23 = vpop.xlane.xlu0 %1065 }
0x1079   : > { %v1067_v25 = vcvt.f32.s32 %v1066_v23 }
0x107b   : > { %v1070_v26 = vadd.s32 %v1069_v24, %v1067_v25 }
0x107d   : > { %vm1073_vm6 = vcmp.eq.s32.totalorder %v1994_v9, %v1070_v26  ;;  %v1072_v43 = vsel %vm1071_vm9, %v1070_v26, 0 }
0x107e   : > { %v1074_v27 = vsel %vm1073_vm6, -1e+30, %v1049_v12 }
0x107f   : > { %v1075_v28 = vsel %vm1050_vm4, %v1074_v27, -inf }
0x1080   : > { %1076 = vmax.xlane.f32.xlu1 %v1075_v28 }
0x10f3   : > { %v1077_v29 = vpop.xlane.xlu1 %1076 }
0x10f4   : > { %vm1078_vm7 = vcmp.ge.f32.partialorder %v1074_v27, %v1077_v29 }
0x10f5   : > { %v1079_v30 = vsel %vm1078_vm7, %v1994_v9, 128 }
0x10f6   : > { %v1080_v31 = vsel %vm1050_vm4, %v1079_v30, 2147483647 }
0x10f7   : > { %v1082_v32 = vshra.s32 %v1080_v31, 16  ;;  %v1081_v34 = vand.u32 65535, %v1080_v31 }
0x10f9   : > { %v1084_v33 = vcvt.s32.f32 %v1082_v32  ;;  %v1083_v36 = vcvt.s32.f32 %v1081_v34 }
0x10fb   : > { %1085 = vmin.xlane.f32.xlu2 %v1084_v33 }
0x116e   : > { %v1086_v35 = vpop.xlane.xlu2 %1085 }
0x116f   : > { %vm1087_vm8 = vcmp.eq.f32.partialorder %v1084_v33, %v1086_v35  ;;  %v1092_v38 = vcvt.f32.s32 %v1086_v35 }
0x1170   : > { %v1088_v37 = vsel %vm1087_vm8, %v1083_v36, inf }
0x1171   : > { %1089 = vmin.xlane.f32.xlu0 %v1088_v37  ;;  %v1093_v40 = vshll.u32 %v1092_v38, 16 }
0x11e4   : > { %v1090_v39 = vpop.xlane.xlu0 %1089 }
0x11e5   : > { %v1091_v41 = vcvt.f32.s32 %v1090_v39 }
0x11e7   : > { %v1094_v42 = vadd.s32 %v1093_v40, %v1091_v41 }
0x11e9   : > { %v1096_v44 = vsel %vm1095_vm10, %v1094_v42, %v1072_v43  ;;  %vm1097_vm11 = vcmp.eq.s32.totalorder %v1994_v9, %v1094_v42 }
0x11ea   : > { %v1098_v45 = vsel %vm1097_vm11, -1e+30, %v1074_v27 }
0x11eb   : > { %v1099_v46 = vsel %vm1050_vm4, %v1098_v45, -inf }
0x11ec   : > { %1100 = vmax.xlane.f32.xlu1 %v1099_v46 }
0x125f   : > { %v1101_v47 = vpop.xlane.xlu1 %1100 }
0x1260   : > { %vm1102_vm12 = vcmp.ge.f32.partialorder %v1098_v45, %v1101_v47 }
0x1261   : > { %v1103_v48 = vsel %vm1102_vm12, %v1994_v9, 128 }
0x1262   : > { %v1104_v49 = vsel %vm1050_vm4, %v1103_v48, 2147483647 }
0x1263   : > { %v1106_v50 = vshra.s32 %v1104_v49, 16  ;;  %v1105_v52 = vand.u32 65535, %v1104_v49 }
0x1265   : > { %v1108_v51 = vcvt.s32.f32 %v1106_v50  ;;  %v1107_v54 = vcvt.s32.f32 %v1105_v52 }
0x1267   : > { %1109 = vmin.xlane.f32.xlu2 %v1108_v51 }
0x12da   : > { %v1110_v53 = vpop.xlane.xlu2 %1109 }
0x12db   : > { %vm1111_vm13 = vcmp.eq.f32.partialorder %v1108_v51, %v1110_v53  ;;  %v1116_v56 = vcvt.f32.s32 %v1110_v53 }
0x12dc   : > { %v1112_v55 = vsel %vm1111_vm13, %v1107_v54, inf }
0x12dd   : > { %1113 = vmin.xlane.f32.xlu0 %v1112_v55  ;;  %v1117_v58 = vshll.u32 %v1116_v56, 16 }
0x1350   : > { %v1114_v57 = vpop.xlane.xlu0 %1113 }
0x1351   : > { %v1115_v59 = vcvt.f32.s32 %v1114_v57 }
0x1353   : > { %v1118_v60 = vadd.s32 %v1117_v58, %v1115_v59 }
0x1355   : > { %v1120_v61 = vsel %vm1119_vm14, %v1118_v60, %v1096_v44  ;;  %vm1121_vm15 = vcmp.eq.s32.totalorder %v1994_v9, %v1118_v60 }
0x1356   : > { %v1122_v62 = vsel %vm1121_vm15, -1e+30, %v1098_v45 }
0x1357   : > { %v1123_v63 = vsel %vm1050_vm4, %v1122_v62, -inf }
0x1358   : > { %1124 = vmax.xlane.f32.xlu1 %v1123_v63 }
0x13cb   : > { %v1125_v1 = vpop.xlane.xlu1 %1124 }
0x13cc   : > { %vm1126_vm1 = vcmp.ge.f32.partialorder %v1122_v62, %v1125_v1 }
0x13cd   : > { %v1127_v3 = vsel %vm1126_vm1, %v1994_v9, 128 }
0x13ce   : > { %v1128_v5 = vsel %vm1050_vm4, %v1127_v3, 2147483647 }
0x13cf   : > { %v1130_v6 = vshra.s32 %v1128_v5, 16  ;;  %v1129_v7 = vand.u32 65535, %v1128_v5 }
0x13d1   : > { %v1132_v2 = vcvt.s32.f32 %v1130_v6  ;;  %v1131_v8 = vcvt.s32.f32 %v1129_v7 }
0x13d3   : > { %1133 = vmin.xlane.f32.xlu2 %v1132_v2 }
0x1446   : > { %v1134_v0 = vpop.xlane.xlu2 %1133 }
0x1447   : > { %vm1135_vm2 = vcmp.eq.f32.partialorder %v1132_v2, %v1134_v0  ;;  %v1140_v12 = vcvt.f32.s32 %v1134_v0 }
0x1448   : > { %v1136_v11 = vsel %vm1135_vm2, %v1131_v8, inf }
0x1449   : > { %1137 = vmin.xlane.f32.xlu0 %v1136_v11  ;;  %v1141_v14 = vshll.u32 %v1140_v12, 16 }
0x14bc   : > { %v1138_v13 = vpop.xlane.xlu0 %1137 }
0x14bd   : > { %v1139_v4 = vcvt.f32.s32 %v1138_v13 }
0x14bf   : > { %v1142_v10 = vadd.s32 %v1141_v14, %v1139_v4 }
0x14c1   : > { %v1144_v15 = vsel %vm1143_vm3, %v1142_v10, %v1120_v61 }
0x14c2   : > { %1145 = vst [vmem:[%s327_s15] sm:$0x1] %v1144_v15 }
0x14c3   : > { %1629 = shalt.err (!%p1626_p9)
}
0x14c4   : > { %1414 = dma.vmem_to_hbm [thread:$0]  (%p1796_p4), %s1158_s30, 16, %s1160_s18, %s1147_s19  }
0x14c5 PF: > { %s1171_s11 = sand.u32 1, %s1660_s24   ;;  %p2068_p10 = scmp.ge.s32.totalorder %s1672_s27, 2 }
0x14c6   : > { %s1172_s17 = scalar_lea.sflag [#allocation4], %s1171_s11 }
0x14c7   : > { %p1428_p13 = pnand %p2068_p10, %p1800_p6 }
0x14c9   : > { %p1429_p11 = pneg %p1428_p13 }
0x14cb   : > { %1655 = dma.done.wait (%p1429_p11), %s1172_s17, 16  }
0x14cc   : > { %1657 = vsyncadd (%p1429_p11), %s1172_s17, 4294967280  ;;  %p21_p0 = scmp.ge.s32.totalorder %s1770_s22, 4   ;;  %s2069_s24 = smov %s1664_s25 }
0x14cd   : > { %s2070_s25 = smov %s1668_s26  ;;  %s2071_s26 = smov %s1781_s29 }
0x14ce   : > { %s2072_s27 = smov %s1770_s22  ;;  %23 = sbr.rel (!%p21_p0) target bundleno = 9 (0x9), region = 106 }
0x14d3   :  { %1177 = vsyncpa [#allocation3], 1 }
0x14d4   :  { %1179 = vsyncpa [#allocation3 + $0x1], 1 }
0x14d5   :  { %1180 = vsyncpa [#allocation6], 1 }
0x14d6   :  { %1181 = vsyncpa [#allocation4], 1 }
0x14d7   :  { %1183 = vsyncpa [#allocation4 + $0x1], 1 }

</bundles_post_ra>
